<compile_context>
chip_gen: v7x
topology: tpu7x:2x2x1
jax: 0.10.0
libtpu: 0.0.40
codegen_flags: <defaults>
</compile_context>

<pallas_src>
import functools

import jax
import jax.numpy as jnp
from jax.experimental import pallas as pl
from jax.experimental.pallas import tpu as pltpu

# ---------------- config (small synthetic DistilBERT) ----------------
VOCAB = 64
MAX_POS = 16
HIDDEN = 32
N_HEADS = 4
HEAD_DIM = HIDDEN // N_HEADS
FFN = 64
N_LAYERS = 2
EPS = 1e-12  # DistilBERT LayerNorm eps

# ---- packed-operand layout ----
# w_h  : [L, H, 4H+FFN]   lanes = [ qkv_w (3H) | o_w (H) | ff1_w (FFN) ]
WH_WIDTH = 4 * HIDDEN + FFN
# w_v  : [VOCAB+MAX_POS + L*FFN, H]  rows = [ word_emb | pos_emb | ff2_w (per layer) ]
FF2_ROW0 = VOCAB + MAX_POS
WV_ROWS = FF2_ROW0 + N_LAYERS * FFN
# vecs : [L*8 + 3, 3H]  per-layer rows then globals
VEC_ROWS_PER_LAYER = 8
R_QKV_B, R_O_B, R_FF1_B, R_FF2_B, R_LN1_G, R_LN1_B, R_LN2_G, R_LN2_B = range(8)
R_EMB_LN_G = N_LAYERS * VEC_ROWS_PER_LAYER
R_EMB_LN_B = R_EMB_LN_G + 1
R_CLS = R_EMB_LN_G + 2            # cls weight in [0:H], cls bias at column H
VEC_N_ROWS = R_CLS + 1
VEC_WIDTH = 3 * HIDDEN


# ---------------- fused forward kernel ----------------
def _fused_bert_kernel(ids_ref, mask_ref, w_h_ref, w_v_ref, vecs_ref, out_ref,
                       *, batch, seq):
    B, S, H = batch, seq, HIDDEN
    BS = B * S
    scale = 1.0 / (HEAD_DIM ** 0.5)

    def layer_norm(x, g, b):
        mean = jnp.mean(x, axis=-1, keepdims=True)
        var = jnp.mean(jnp.square(x - mean), axis=-1, keepdims=True)
        return (x - mean) * jax.lax.rsqrt(var + EPS) * g + b

    def vec(row, width):
        return vecs_ref[row:row + 1, 0:width]            # [1, width]

    # ---- in-kernel embedding lookup: two-hot (token + position) MXU matmul ----
    # ids_ref[:,0] = token id in [0,VOCAB); ids_ref[:,1] = position id + VOCAB.
    col = jax.lax.broadcasted_iota(jnp.int32, (BS, VOCAB + MAX_POS), 1)
    two_hot = ((col == ids_ref[:, 0:1]) | (col == ids_ref[:, 1:2])).astype(jnp.float32)
    emb_tbl = w_v_ref[0:VOCAB + MAX_POS, :]               # [VOCAB+MAX_POS, H]
    h = jnp.dot(two_hot, emb_tbl, preferred_element_type=jnp.float32)   # [B*S, H]
    # Embedding LayerNorm (dropout is identity at eval).
    h = layer_norm(h, vec(R_EMB_LN_G, H), vec(R_EMB_LN_B, H))

    # ---- additive attention mask, hoisted out of the layer/head loops ----
    maskf = mask_ref[...]                                  # [B, S] (1 = keep)
    neg_bias = (1.0 - maskf)[:, None, :] * jnp.float32(-1e9)   # [B, 1, S]

    for l in range(N_LAYERS):
        w_slab = w_h_ref[l]                                # [H, 3H | H | FFN]
        qkv_w = w_slab[:, 0:3 * H]
        o_w = w_slab[:, 3 * H:4 * H]
        ff1_w = w_slab[:, 4 * H:4 * H + FFN]
        base = l * VEC_ROWS_PER_LAYER

        # --- fused QKV projection: one MXU pass with N = 3H ---
        qkv = jnp.dot(h, qkv_w, preferred_element_type=jnp.float32)
        qkv = qkv + vec(base + R_QKV_B, 3 * H)             # [B*S, 3H]
        qkv3 = qkv.reshape(B, S, 3 * H)                    # one reshape per layer

        # --- multi-head attention; O-projection folded into the head loop so
        #     no per-head reshapes and no concatenate (attn = sum_h ctx_h@O_h) ---
        attn = jnp.zeros((BS, H), jnp.float32)
        for hd in range(N_HEADS):
            lo = hd * HEAD_DIM
            qh = qkv3[:, :, lo:lo + HEAD_DIM]              # [B, S, Dh] lane slice
            kh = qkv3[:, :, H + lo:H + lo + HEAD_DIM]
            vh = qkv3[:, :, 2 * H + lo:2 * H + lo + HEAD_DIM]
            s = jnp.einsum('bqd,bkd->bqk', qh, kh,
                           preferred_element_type=jnp.float32) * scale + neg_bias
            s = s - jnp.max(s, axis=-1, keepdims=True)
            p = jnp.exp(s)
            p = p * pl.reciprocal(jnp.sum(p, axis=-1, keepdims=True), approx=True)
            ctx = jnp.einsum('bqk,bkd->bqd', p, vh,
                             preferred_element_type=jnp.float32)        # [B, S, Dh]
            attn = attn + jnp.dot(ctx.reshape(BS, HEAD_DIM),
                                  o_w[lo:lo + HEAD_DIM, :],
                                  preferred_element_type=jnp.float32)
        attn = attn + vec(base + R_O_B, H)

        # --- residual + LayerNorm (post-LN, DistilBERT) ---
        h = layer_norm(attn + h, vec(base + R_LN1_G, H), vec(base + R_LN1_B, H))

        # --- FFN + residual + LayerNorm ---
        f = jnp.dot(h, ff1_w, preferred_element_type=jnp.float32) + vec(base + R_FF1_B, FFN)
        # TODO(synk): DistilBERT uses exact (erf) GELU; tanh approximation used here.
        f = jax.nn.gelu(f, approximate=True)
        ff2_w = w_v_ref[FF2_ROW0 + l * FFN:FF2_ROW0 + (l + 1) * FFN, :]  # [FFN, H]
        f = jnp.dot(f, ff2_w, preferred_element_type=jnp.float32) + vec(base + R_FF2_B, H)
        h = layer_norm(f + h, vec(base + R_LN2_G, H), vec(base + R_LN2_B, H))

    # ---- masked mean pooling + classifier head (VPU reduce, exact divide) ----
    h3 = h.reshape(B, S, H)
    num = jnp.sum(h3 * maskf[:, :, None], axis=1)          # [B, H]
    den = jnp.sum(maskf, axis=1, keepdims=True)            # [B, 1]
    den = jnp.maximum(den, jnp.float32(1.0))  # guard all-masked rows (torch ref would NaN)
    pooled = num / den
    cls_w = vec(R_CLS, H)                                  # [1, H]
    cls_b = vecs_ref[R_CLS:R_CLS + 1, H:H + 1]             # [1, 1]
    logit = jnp.einsum('ch,bh->cb', cls_w, pooled,
                       preferred_element_type=jnp.float32) + cls_b      # [1, B]
    out_ref[...] = logit.astype(out_ref.dtype)             # lane-dense output


def fused_forward(ids2, maskf, params, batch, seq):
    vmem = pltpu.MemorySpace.VMEM
    return pl.pallas_call(
        functools.partial(_fused_bert_kernel, batch=batch, seq=seq),
        out_shape=jax.ShapeDtypeStruct((1, batch), jnp.float32),
        in_specs=[pl.BlockSpec(memory_space=vmem)] * 5,
        out_specs=pl.BlockSpec(memory_space=vmem),
    )(ids2, maskf, params["w_h"], params["w_v"], params["vecs"])


# ---------------- parameters (packed into 3 slabs for the fused kernel) ----------------
def init_params(key):
    def dense(k, fan_in, fan_out):
        return jax.random.normal(k, (fan_in, fan_out), jnp.float32) * 0.02

    keys = jax.random.split(key, 3 + N_LAYERS)
    w_h, ff2 = [], []
    for l in range(N_LAYERS):
        lk = jax.random.split(keys[3 + l], 6)
        qw, kw, vw = dense(lk[0], HIDDEN, HIDDEN), dense(lk[1], HIDDEN, HIDDEN), dense(lk[2], HIDDEN, HIDDEN)
        ow = dense(lk[3], HIDDEN, HIDDEN)
        f1 = dense(lk[4], HIDDEN, FFN)
        w_h.append(jnp.concatenate([qw, kw, vw, ow, f1], axis=1))   # [H, 4H+FFN]
        ff2.append(dense(lk[5], FFN, HIDDEN))                        # [FFN, H]
    w_h = jnp.stack(w_h)                                             # [L, H, 192]

    word_emb = jax.random.normal(keys[0], (VOCAB, HIDDEN), jnp.float32) * 0.02
    pos_emb = jax.random.normal(keys[1], (MAX_POS, HIDDEN), jnp.float32) * 0.02
    w_v = jnp.concatenate([word_emb, pos_emb] + ff2, axis=0)         # [208, H]

    # All biases / LN betas / cls bias are zero, LN gammas are one (as before).
    vecs = jnp.zeros((VEC_N_ROWS, VEC_WIDTH), jnp.float32)
    for l in range(N_LAYERS):
        b = l * VEC_ROWS_PER_LAYER
        vecs = vecs.at[b + R_LN1_G, 0:HIDDEN].set(1.0)
        vecs = vecs.at[b + R_LN2_G, 0:HIDDEN].set(1.0)
    vecs = vecs.at[R_EMB_LN_G, 0:HIDDEN].set(1.0)
    cls_w = dense(keys[2], 1, HIDDEN)                                # [1, H]
    vecs = vecs.at[R_CLS, 0:HIDDEN].set(cls_w[0])

    return {"w_h": w_h, "w_v": w_v, "vecs": vecs}


# ---------------- model glue (tiny integer metadata only, no HBM activation round trip) ----------------
def bert_classifier_forward(params, input_ids, attention_mask):
    B, S = input_ids.shape
    tok_ids = input_ids.reshape(B * S, 1).astype(jnp.int32)
    pos_ids = jnp.tile(jnp.arange(S, dtype=jnp.int32), B).reshape(B * S, 1) + VOCAB
    ids2 = jnp.concatenate([tok_ids, pos_ids], axis=1)               # [B*S, 2] int32
    maskf = attention_mask.astype(jnp.float32)                       # [B, S]
    out = fused_forward(ids2, maskf, params, B, S)                   # [1, B]
    return out[0]                                                    # [B]


if __name__ == "__main__":
    key = jax.random.PRNGKey(0)
    pkey, ikey = jax.random.split(key)
    params = init_params(pkey)

    B, S = 2, 8
    input_ids = jax.random.randint(ikey, (B, S), 0, VOCAB, dtype=jnp.int32)
    attention_mask = jnp.array(
        [[1, 1, 1, 1, 1, 1, 1, 1],
         [1, 1, 1, 1, 1, 0, 0, 0]], dtype=jnp.int32)

    out = bert_classifier_forward(params, input_ids, attention_mask)
    out = jax.block_until_ready(out)
    assert out.shape == (B,), out.shape
    assert bool(jnp.all(jnp.isfinite(out)))
    print("KERNEL_OK")
</pallas_src>

<mosaic_0001>
module attributes {stable_mosaic.version = 11 : i64} {
  func.func @_fused_bert_kernel(%arg0: memref<16x2xi32, #tpu.memory_space<vmem>>, %arg1: memref<2x8xf32, #tpu.memory_space<vmem>>, %arg2: memref<2x32x192xf32, #tpu.memory_space<vmem>>, %arg3: memref<208x32xf32, #tpu.memory_space<vmem>>, %arg4: memref<19x96xf32, #tpu.memory_space<vmem>>, %arg5: memref<1x2xf32, #tpu.memory_space<vmem>>) attributes {dimension_semantics = [], scalar_prefetch = 0 : i64, scratch_operands = 0 : i64, tpu.core_type = #tpu.core_type<tc>} {
    %0 = tpu.iota {dimensions = array<i32: 1>} : vector<16x80xi32>
    %c0 = arith.constant 0 : index
    %c0_0 = arith.constant 0 : index
    %1 = vector.load %arg0[%c0, %c0_0] : memref<16x2xi32, #tpu.memory_space<vmem>>, vector<16x1xi32>
    %2 = vector.broadcast %1 : vector<16x1xi32> to vector<16x80xi32>
    %3 = arith.cmpi eq, %0, %2 : vector<16x80xi32>
    %c0_1 = arith.constant 0 : index
    %c1 = arith.constant 1 : index
    %4 = vector.load %arg0[%c0_1, %c1] : memref<16x2xi32, #tpu.memory_space<vmem>>, vector<16x1xi32>
    %5 = vector.broadcast %4 : vector<16x1xi32> to vector<16x80xi32>
    %6 = arith.cmpi eq, %0, %5 : vector<16x80xi32>
    %7 = arith.ori %3, %6 : vector<16x80xi1>
    %8 = arith.extui %7 : vector<16x80xi1> to vector<16x80xi32>
    %9 = arith.sitofp %8 : vector<16x80xi32> to vector<16x80xf32>
    %c0_2 = arith.constant 0 : index
    %c0_3 = arith.constant 0 : index
    %10 = vector.load %arg3[%c0_2, %c0_3] : memref<208x32xf32, #tpu.memory_space<vmem>>, vector<80x32xf32>
    %cst = arith.constant dense<0.000000e+00> : vector<16x32xf32>
    %11 = tpu.matmul %9, %10, %cst {dimension_numbers = #tpu.dot_dimension_numbers<[1], [0], [0], [1], [0, 0, 1, 1], [], []>} : vector<16x80xf32>, vector<80x32xf32>, vector<16x32xf32> -> vector<16x32xf32>
    %c16 = arith.constant 16 : index
    %c0_4 = arith.constant 0 : index
    %12 = vector.load %arg4[%c16, %c0_4] : memref<19x96xf32, #tpu.memory_space<vmem>>, vector<1x32xf32>
    %c17 = arith.constant 17 : index
    %c0_5 = arith.constant 0 : index
    %13 = vector.load %arg4[%c17, %c0_5] : memref<19x96xf32, #tpu.memory_space<vmem>>, vector<1x32xf32>
    %cst_6 = arith.constant dense<0.000000e+00> : vector<16xf32>
    %14 = vector.multi_reduction <add>, %11, %cst_6 [1] : vector<16x32xf32> to vector<16xf32>
    %15 = vector.shape_cast %14 : vector<16xf32> to vector<16x1xf32>
    %cst_7 = arith.constant 3.200000e+01 : f32
    %16 = vector.broadcast %cst_7 : f32 to vector<16x1xf32>
    %17 = arith.divf %15, %16 : vector<16x1xf32>
    %18 = vector.broadcast %17 : vector<16x1xf32> to vector<16x32xf32>
    %19 = arith.subf %11, %18 : vector<16x32xf32>
    %20 = arith.mulf %19, %19 : vector<16x32xf32>
    %cst_8 = arith.constant dense<0.000000e+00> : vector<16xf32>
    %21 = vector.multi_reduction <add>, %20, %cst_8 [1] : vector<16x32xf32> to vector<16xf32>
    %22 = vector.shape_cast %21 : vector<16xf32> to vector<16x1xf32>
    %cst_9 = arith.constant 3.200000e+01 : f32
    %23 = vector.broadcast %cst_9 : f32 to vector<16x1xf32>
    %24 = arith.divf %22, %23 : vector<16x1xf32>
    %25 = vector.broadcast %17 : vector<16x1xf32> to vector<16x32xf32>
    %26 = arith.subf %11, %25 : vector<16x32xf32>
    %cst_10 = arith.constant 9.99999996E-13 : f32
    %27 = vector.broadcast %cst_10 : f32 to vector<16x1xf32>
    %28 = arith.addf %24, %27 : vector<16x1xf32>
    %29 = math.rsqrt %28 : vector<16x1xf32>
    %30 = vector.broadcast %29 : vector<16x1xf32> to vector<16x32xf32>
    %31 = arith.mulf %26, %30 : vector<16x32xf32>
    %32 = vector.broadcast %12 : vector<1x32xf32> to vector<16x32xf32>
    %33 = arith.mulf %31, %32 : vector<16x32xf32>
    %34 = vector.broadcast %13 : vector<1x32xf32> to vector<16x32xf32>
    %35 = arith.addf %33, %34 : vector<16x32xf32>
    %c0_11 = arith.constant 0 : index
    %c0_12 = arith.constant 0 : index
    %36 = vector.load %arg1[%c0_11, %c0_12] : memref<2x8xf32, #tpu.memory_space<vmem>>, vector<2x8xf32>
    %cst_13 = arith.constant 1.000000e+00 : f32
    %37 = vector.broadcast %cst_13 : f32 to vector<2x8xf32>
    %38 = arith.subf %37, %36 : vector<2x8xf32>
    %39 = vector.shape_cast %38 : vector<2x8xf32> to vector<2x1x8xf32>
    %cst_14 = arith.constant -1.000000e+09 : f32
    %40 = vector.broadcast %cst_14 : f32 to vector<2x1x8xf32>
    %41 = arith.mulf %39, %40 : vector<2x1x8xf32>
    %c0_15 = arith.constant 0 : index
    %c0_16 = arith.constant 0 : index
    %c0_17 = arith.constant 0 : index
    %42 = vector.load %arg2[%c0_15, %c0_16, %c0_17] : memref<2x32x192xf32, #tpu.memory_space<vmem>>, vector<1x32x192xf32>
    %43 = vector.shape_cast %42 : vector<1x32x192xf32> to vector<32x192xf32>
    %44 = vector.extract_strided_slice %43 {offsets = [0, 0], sizes = [32, 96], strides = [1, 1]} : vector<32x192xf32> to vector<32x96xf32>
    %45 = vector.extract_strided_slice %43 {offsets = [0, 96], sizes = [32, 32], strides = [1, 1]} : vector<32x192xf32> to vector<32x32xf32>
    %46 = vector.extract_strided_slice %43 {offsets = [0, 128], sizes = [32, 64], strides = [1, 1]} : vector<32x192xf32> to vector<32x64xf32>
    %cst_18 = arith.constant dense<0.000000e+00> : vector<16x96xf32>
    %47 = tpu.matmul %35, %44, %cst_18 {dimension_numbers = #tpu.dot_dimension_numbers<[1], [0], [0], [1], [0, 0, 1, 1], [], []>} : vector<16x32xf32>, vector<32x96xf32>, vector<16x96xf32> -> vector<16x96xf32>
    %c0_19 = arith.constant 0 : index
    %c0_20 = arith.constant 0 : index
    %48 = vector.load %arg4[%c0_19, %c0_20] : memref<19x96xf32, #tpu.memory_space<vmem>>, vector<1x96xf32>
    %49 = vector.broadcast %48 : vector<1x96xf32> to vector<16x96xf32>
    %50 = arith.addf %47, %49 : vector<16x96xf32>
    %51 = vector.shape_cast %50 : vector<16x96xf32> to vector<2x8x96xf32>
    %cst_21 = arith.constant 0.000000e+00 : f32
    %52 = vector.broadcast %cst_21 : f32 to vector<16x32xf32>
    %53 = vector.extract_strided_slice %51 {offsets = [0, 0, 0], sizes = [2, 8, 8], strides = [1, 1, 1]} : vector<2x8x96xf32> to vector<2x8x8xf32>
    %54 = vector.extract_strided_slice %51 {offsets = [0, 0, 32], sizes = [2, 8, 8], strides = [1, 1, 1]} : vector<2x8x96xf32> to vector<2x8x8xf32>
    %55 = vector.extract_strided_slice %51 {offsets = [0, 0, 64], sizes = [2, 8, 8], strides = [1, 1, 1]} : vector<2x8x96xf32> to vector<2x8x8xf32>
    "tpu.trace_start"() <{level = 10 : i32, message = "bqd,bkd->bqk"}> : () -> ()
    %cst_22 = arith.constant dense<0.000000e+00> : vector<2x8x8xf32>
    %56 = tpu.matmul %53, %54, %cst_22 {dimension_numbers = #tpu.dot_dimension_numbers<[2], [2], [1], [1], [0, 0, 0, 1, 1, 1], [0], [0]>} : vector<2x8x8xf32>, vector<2x8x8xf32>, vector<2x8x8xf32> -> vector<2x8x8xf32>
    "tpu.trace_stop"() : () -> ()
    %cst_23 = arith.constant 0.353553385 : f32
    %57 = vector.broadcast %cst_23 : f32 to vector<2x8x8xf32>
    %58 = arith.mulf %56, %57 : vector<2x8x8xf32>
    %59 = vector.broadcast %41 : vector<2x1x8xf32> to vector<2x8x8xf32>
    %60 = arith.addf %58, %59 : vector<2x8x8xf32>
    %cst_24 = arith.constant dense<0xFF800000> : vector<2x8xf32>
    %61 = vector.multi_reduction <maximumf>, %60, %cst_24 [2] : vector<2x8x8xf32> to vector<2x8xf32>
    %62 = vector.shape_cast %61 : vector<2x8xf32> to vector<2x8x1xf32>
    %63 = vector.broadcast %62 : vector<2x8x1xf32> to vector<2x8x8xf32>
    %64 = arith.subf %60, %63 : vector<2x8x8xf32>
    %65 = math.exp %64 : vector<2x8x8xf32>
    %cst_25 = arith.constant dense<0.000000e+00> : vector<2x8xf32>
    %66 = vector.multi_reduction <add>, %65, %cst_25 [2] : vector<2x8x8xf32> to vector<2x8xf32>
    %67 = vector.shape_cast %66 : vector<2x8xf32> to vector<2x8x1xf32>
    %68 = tpu.reciprocal %67 {approx = true} : vector<2x8x1xf32> -> vector<2x8x1xf32>
    %69 = vector.broadcast %68 : vector<2x8x1xf32> to vector<2x8x8xf32>
    %70 = arith.mulf %65, %69 : vector<2x8x8xf32>
    "tpu.trace_start"() <{level = 10 : i32, message = "bqk,bkd->bqd"}> : () -> ()
    %cst_26 = arith.constant dense<0.000000e+00> : vector<2x8x8xf32>
    %71 = tpu.matmul %70, %55, %cst_26 {dimension_numbers = #tpu.dot_dimension_numbers<[2], [1], [1], [2], [0, 0, 0, 1, 1, 2], [0], [0]>} : vector<2x8x8xf32>, vector<2x8x8xf32>, vector<2x8x8xf32> -> vector<2x8x8xf32>
    "tpu.trace_stop"() : () -> ()
    %72 = vector.shape_cast %71 : vector<2x8x8xf32> to vector<16x8xf32>
    %73 = vector.extract_strided_slice %45 {offsets = [0, 0], sizes = [8, 32], strides = [1, 1]} : vector<32x32xf32> to vector<8x32xf32>
    %cst_27 = arith.constant dense<0.000000e+00> : vector<16x32xf32>
    %74 = tpu.matmul %72, %73, %cst_27 {dimension_numbers = #tpu.dot_dimension_numbers<[1], [0], [0], [1], [0, 0, 1, 1], [], []>} : vector<16x8xf32>, vector<8x32xf32>, vector<16x32xf32> -> vector<16x32xf32>
    %75 = arith.addf %52, %74 : vector<16x32xf32>
    %76 = vector.extract_strided_slice %51 {offsets = [0, 0, 8], sizes = [2, 8, 8], strides = [1, 1, 1]} : vector<2x8x96xf32> to vector<2x8x8xf32>
    %77 = vector.extract_strided_slice %51 {offsets = [0, 0, 40], sizes = [2, 8, 8], strides = [1, 1, 1]} : vector<2x8x96xf32> to vector<2x8x8xf32>
    %78 = vector.extract_strided_slice %51 {offsets = [0, 0, 72], sizes = [2, 8, 8], strides = [1, 1, 1]} : vector<2x8x96xf32> to vector<2x8x8xf32>
    "tpu.trace_start"() <{level = 10 : i32, message = "bqd,bkd->bqk"}> : () -> ()
    %cst_28 = arith.constant dense<0.000000e+00> : vector<2x8x8xf32>
    %79 = tpu.matmul %76, %77, %cst_28 {dimension_numbers = #tpu.dot_dimension_numbers<[2], [2], [1], [1], [0, 0, 0, 1, 1, 1], [0], [0]>} : vector<2x8x8xf32>, vector<2x8x8xf32>, vector<2x8x8xf32> -> vector<2x8x8xf32>
    "tpu.trace_stop"() : () -> ()
    %cst_29 = arith.constant 0.353553385 : f32
    %80 = vector.broadcast %cst_29 : f32 to vector<2x8x8xf32>
    %81 = arith.mulf %79, %80 : vector<2x8x8xf32>
    %82 = vector.broadcast %41 : vector<2x1x8xf32> to vector<2x8x8xf32>
    %83 = arith.addf %81, %82 : vector<2x8x8xf32>
    %cst_30 = arith.constant dense<0xFF800000> : vector<2x8xf32>
    %84 = vector.multi_reduction <maximumf>, %83, %cst_30 [2] : vector<2x8x8xf32> to vector<2x8xf32>
    %85 = vector.shape_cast %84 : vector<2x8xf32> to vector<2x8x1xf32>
    %86 = vector.broadcast %85 : vector<2x8x1xf32> to vector<2x8x8xf32>
    %87 = arith.subf %83, %86 : vector<2x8x8xf32>
    %88 = math.exp %87 : vector<2x8x8xf32>
    %cst_31 = arith.constant dense<0.000000e+00> : vector<2x8xf32>
    %89 = vector.multi_reduction <add>, %88, %cst_31 [2] : vector<2x8x8xf32> to vector<2x8xf32>
    %90 = vector.shape_cast %89 : vector<2x8xf32> to vector<2x8x1xf32>
    %91 = tpu.reciprocal %90 {approx = true} : vector<2x8x1xf32> -> vector<2x8x1xf32>
    %92 = vector.broadcast %91 : vector<2x8x1xf32> to vector<2x8x8xf32>
    %93 = arith.mulf %88, %92 : vector<2x8x8xf32>
    "tpu.trace_start"() <{level = 10 : i32, message = "bqk,bkd->bqd"}> : () -> ()
    %cst_32 = arith.constant dense<0.000000e+00> : vector<2x8x8xf32>
    %94 = tpu.matmul %93, %78, %cst_32 {dimension_numbers = #tpu.dot_dimension_numbers<[2], [1], [1], [2], [0, 0, 0, 1, 1, 2], [0], [0]>} : vector<2x8x8xf32>, vector<2x8x8xf32>, vector<2x8x8xf32> -> vector<2x8x8xf32>
    "tpu.trace_stop"() : () -> ()
    %95 = vector.shape_cast %94 : vector<2x8x8xf32> to vector<16x8xf32>
    %96 = vector.extract_strided_slice %45 {offsets = [8, 0], sizes = [8, 32], strides = [1, 1]} : vector<32x32xf32> to vector<8x32xf32>
    %cst_33 = arith.constant dense<0.000000e+00> : vector<16x32xf32>
    %97 = tpu.matmul %95, %96, %cst_33 {dimension_numbers = #tpu.dot_dimension_numbers<[1], [0], [0], [1], [0, 0, 1, 1], [], []>} : vector<16x8xf32>, vector<8x32xf32>, vector<16x32xf32> -> vector<16x32xf32>
    %98 = arith.addf %75, %97 : vector<16x32xf32>
    %99 = vector.extract_strided_slice %51 {offsets = [0, 0, 16], sizes = [2, 8, 8], strides = [1, 1, 1]} : vector<2x8x96xf32> to vector<2x8x8xf32>
    %100 = vector.extract_strided_slice %51 {offsets = [0, 0, 48], sizes = [2, 8, 8], strides = [1, 1, 1]} : vector<2x8x96xf32> to vector<2x8x8xf32>
    %101 = vector.extract_strided_slice %51 {offsets = [0, 0, 80], sizes = [2, 8, 8], strides = [1, 1, 1]} : vector<2x8x96xf32> to vector<2x8x8xf32>
    "tpu.trace_start"() <{level = 10 : i32, message = "bqd,bkd->bqk"}> : () -> ()
    %cst_34 = arith.constant dense<0.000000e+00> : vector<2x8x8xf32>
    %102 = tpu.matmul %99, %100, %cst_34 {dimension_numbers = #tpu.dot_dimension_numbers<[2], [2], [1], [1], [0, 0, 0, 1, 1, 1], [0], [0]>} : vector<2x8x8xf32>, vector<2x8x8xf32>, vector<2x8x8xf32> -> vector<2x8x8xf32>
    "tpu.trace_stop"() : () -> ()
    %cst_35 = arith.constant 0.353553385 : f32
    %103 = vector.broadcast %cst_35 : f32 to vector<2x8x8xf32>
    %104 = arith.mulf %102, %103 : vector<2x8x8xf32>
    %105 = vector.broadcast %41 : vector<2x1x8xf32> to vector<2x8x8xf32>
    %106 = arith.addf %104, %105 : vector<2x8x8xf32>
    %cst_36 = arith.constant dense<0xFF800000> : vector<2x8xf32>
    %107 = vector.multi_reduction <maximumf>, %106, %cst_36 [2] : vector<2x8x8xf32> to vector<2x8xf32>
    %108 = vector.shape_cast %107 : vector<2x8xf32> to vector<2x8x1xf32>
    %109 = vector.broadcast %108 : vector<2x8x1xf32> to vector<2x8x8xf32>
    %110 = arith.subf %106, %109 : vector<2x8x8xf32>
    %111 = math.exp %110 : vector<2x8x8xf32>
    %cst_37 = arith.constant dense<0.000000e+00> : vector<2x8xf32>
    %112 = vector.multi_reduction <add>, %111, %cst_37 [2] : vector<2x8x8xf32> to vector<2x8xf32>
    %113 = vector.shape_cast %112 : vector<2x8xf32> to vector<2x8x1xf32>
    %114 = tpu.reciprocal %113 {approx = true} : vector<2x8x1xf32> -> vector<2x8x1xf32>
    %115 = vector.broadcast %114 : vector<2x8x1xf32> to vector<2x8x8xf32>
    %116 = arith.mulf %111, %115 : vector<2x8x8xf32>
    "tpu.trace_start"() <{level = 10 : i32, message = "bqk,bkd->bqd"}> : () -> ()
    %cst_38 = arith.constant dense<0.000000e+00> : vector<2x8x8xf32>
    %117 = tpu.matmul %116, %101, %cst_38 {dimension_numbers = #tpu.dot_dimension_numbers<[2], [1], [1], [2], [0, 0, 0, 1, 1, 2], [0], [0]>} : vector<2x8x8xf32>, vector<2x8x8xf32>, vector<2x8x8xf32> -> vector<2x8x8xf32>
    "tpu.trace_stop"() : () -> ()
    %118 = vector.shape_cast %117 : vector<2x8x8xf32> to vector<16x8xf32>
    %119 = vector.extract_strided_slice %45 {offsets = [16, 0], sizes = [8, 32], strides = [1, 1]} : vector<32x32xf32> to vector<8x32xf32>
    %cst_39 = arith.constant dense<0.000000e+00> : vector<16x32xf32>
    %120 = tpu.matmul %118, %119, %cst_39 {dimension_numbers = #tpu.dot_dimension_numbers<[1], [0], [0], [1], [0, 0, 1, 1], [], []>} : vector<16x8xf32>, vector<8x32xf32>, vector<16x32xf32> -> vector<16x32xf32>
    %121 = arith.addf %98, %120 : vector<16x32xf32>
    %122 = vector.extract_strided_slice %51 {offsets = [0, 0, 24], sizes = [2, 8, 8], strides = [1, 1, 1]} : vector<2x8x96xf32> to vector<2x8x8xf32>
    %123 = vector.extract_strided_slice %51 {offsets = [0, 0, 56], sizes = [2, 8, 8], strides = [1, 1, 1]} : vector<2x8x96xf32> to vector<2x8x8xf32>
    %124 = vector.extract_strided_slice %51 {offsets = [0, 0, 88], sizes = [2, 8, 8], strides = [1, 1, 1]} : vector<2x8x96xf32> to vector<2x8x8xf32>
    "tpu.trace_start"() <{level = 10 : i32, message = "bqd,bkd->bqk"}> : () -> ()
    %cst_40 = arith.constant dense<0.000000e+00> : vector<2x8x8xf32>
    %125 = tpu.matmul %122, %123, %cst_40 {dimension_numbers = #tpu.dot_dimension_numbers<[2], [2], [1], [1], [0, 0, 0, 1, 1, 1], [0], [0]>} : vector<2x8x8xf32>, vector<2x8x8xf32>, vector<2x8x8xf32> -> vector<2x8x8xf32>
    "tpu.trace_stop"() : () -> ()
    %cst_41 = arith.constant 0.353553385 : f32
    %126 = vector.broadcast %cst_41 : f32 to vector<2x8x8xf32>
    %127 = arith.mulf %125, %126 : vector<2x8x8xf32>
    %128 = vector.broadcast %41 : vector<2x1x8xf32> to vector<2x8x8xf32>
    %129 = arith.addf %127, %128 : vector<2x8x8xf32>
    %cst_42 = arith.constant dense<0xFF800000> : vector<2x8xf32>
    %130 = vector.multi_reduction <maximumf>, %129, %cst_42 [2] : vector<2x8x8xf32> to vector<2x8xf32>
    %131 = vector.shape_cast %130 : vector<2x8xf32> to vector<2x8x1xf32>
    %132 = vector.broadcast %131 : vector<2x8x1xf32> to vector<2x8x8xf32>
    %133 = arith.subf %129, %132 : vector<2x8x8xf32>
    %134 = math.exp %133 : vector<2x8x8xf32>
    %cst_43 = arith.constant dense<0.000000e+00> : vector<2x8xf32>
    %135 = vector.multi_reduction <add>, %134, %cst_43 [2] : vector<2x8x8xf32> to vector<2x8xf32>
    %136 = vector.shape_cast %135 : vector<2x8xf32> to vector<2x8x1xf32>
    %137 = tpu.reciprocal %136 {approx = true} : vector<2x8x1xf32> -> vector<2x8x1xf32>
    %138 = vector.broadcast %137 : vector<2x8x1xf32> to vector<2x8x8xf32>
    %139 = arith.mulf %134, %138 : vector<2x8x8xf32>
    "tpu.trace_start"() <{level = 10 : i32, message = "bqk,bkd->bqd"}> : () -> ()
    %cst_44 = arith.constant dense<0.000000e+00> : vector<2x8x8xf32>
    %140 = tpu.matmul %139, %124, %cst_44 {dimension_numbers = #tpu.dot_dimension_numbers<[2], [1], [1], [2], [0, 0, 0, 1, 1, 2], [0], [0]>} : vector<2x8x8xf32>, vector<2x8x8xf32>, vector<2x8x8xf32> -> vector<2x8x8xf32>
    "tpu.trace_stop"() : () -> ()
    %141 = vector.shape_cast %140 : vector<2x8x8xf32> to vector<16x8xf32>
    %142 = vector.extract_strided_slice %45 {offsets = [24, 0], sizes = [8, 32], strides = [1, 1]} : vector<32x32xf32> to vector<8x32xf32>
    %cst_45 = arith.constant dense<0.000000e+00> : vector<16x32xf32>
    %143 = tpu.matmul %141, %142, %cst_45 {dimension_numbers = #tpu.dot_dimension_numbers<[1], [0], [0], [1], [0, 0, 1, 1], [], []>} : vector<16x8xf32>, vector<8x32xf32>, vector<16x32xf32> -> vector<16x32xf32>
    %144 = arith.addf %121, %143 : vector<16x32xf32>
    %c1_46 = arith.constant 1 : index
    %c0_47 = arith.constant 0 : index
    %145 = vector.load %arg4[%c1_46, %c0_47] : memref<19x96xf32, #tpu.memory_space<vmem>>, vector<1x32xf32>
    %146 = vector.broadcast %145 : vector<1x32xf32> to vector<16x32xf32>
    %147 = arith.addf %144, %146 : vector<16x32xf32>
    %148 = arith.addf %147, %35 : vector<16x32xf32>
    %c4 = arith.constant 4 : index
    %c0_48 = arith.constant 0 : index
    %149 = vector.load %arg4[%c4, %c0_48] : memref<19x96xf32, #tpu.memory_space<vmem>>, vector<1x32xf32>
    %c5 = arith.constant 5 : index
    %c0_49 = arith.constant 0 : index
    %150 = vector.load %arg4[%c5, %c0_49] : memref<19x96xf32, #tpu.memory_space<vmem>>, vector<1x32xf32>
    %cst_50 = arith.constant dense<0.000000e+00> : vector<16xf32>
    %151 = vector.multi_reduction <add>, %148, %cst_50 [1] : vector<16x32xf32> to vector<16xf32>
    %152 = vector.shape_cast %151 : vector<16xf32> to vector<16x1xf32>
    %cst_51 = arith.constant 3.200000e+01 : f32
    %153 = vector.broadcast %cst_51 : f32 to vector<16x1xf32>
    %154 = arith.divf %152, %153 : vector<16x1xf32>
    %155 = vector.broadcast %154 : vector<16x1xf32> to vector<16x32xf32>
    %156 = arith.subf %148, %155 : vector<16x32xf32>
    %157 = arith.mulf %156, %156 : vector<16x32xf32>
    %cst_52 = arith.constant dense<0.000000e+00> : vector<16xf32>
    %158 = vector.multi_reduction <add>, %157, %cst_52 [1] : vector<16x32xf32> to vector<16xf32>
    %159 = vector.shape_cast %158 : vector<16xf32> to vector<16x1xf32>
    %cst_53 = arith.constant 3.200000e+01 : f32
    %160 = vector.broadcast %cst_53 : f32 to vector<16x1xf32>
    %161 = arith.divf %159, %160 : vector<16x1xf32>
    %162 = vector.broadcast %154 : vector<16x1xf32> to vector<16x32xf32>
    %163 = arith.subf %148, %162 : vector<16x32xf32>
    %cst_54 = arith.constant 9.99999996E-13 : f32
    %164 = vector.broadcast %cst_54 : f32 to vector<16x1xf32>
    %165 = arith.addf %161, %164 : vector<16x1xf32>
    %166 = math.rsqrt %165 : vector<16x1xf32>
    %167 = vector.broadcast %166 : vector<16x1xf32> to vector<16x32xf32>
    %168 = arith.mulf %163, %167 : vector<16x32xf32>
    %169 = vector.broadcast %149 : vector<1x32xf32> to vector<16x32xf32>
    %170 = arith.mulf %168, %169 : vector<16x32xf32>
    %171 = vector.broadcast %150 : vector<1x32xf32> to vector<16x32xf32>
    %172 = arith.addf %170, %171 : vector<16x32xf32>
    %cst_55 = arith.constant dense<0.000000e+00> : vector<16x64xf32>
    %173 = tpu.matmul %172, %46, %cst_55 {dimension_numbers = #tpu.dot_dimension_numbers<[1], [0], [0], [1], [0, 0, 1, 1], [], []>} : vector<16x32xf32>, vector<32x64xf32>, vector<16x64xf32> -> vector<16x64xf32>
    %c2 = arith.constant 2 : index
    %c0_56 = arith.constant 0 : index
    %174 = vector.load %arg4[%c2, %c0_56] : memref<19x96xf32, #tpu.memory_space<vmem>>, vector<1x64xf32>
    %175 = vector.broadcast %174 : vector<1x64xf32> to vector<16x64xf32>
    %176 = arith.addf %173, %175 : vector<16x64xf32>
    %177 = arith.mulf %176, %176 : vector<16x64xf32>
    %178 = arith.mulf %176, %177 : vector<16x64xf32>
    %cst_57 = arith.constant 4.471500e-02 : f32
    %179 = vector.broadcast %cst_57 : f32 to vector<16x64xf32>
    %180 = arith.mulf %179, %178 : vector<16x64xf32>
    %181 = arith.addf %176, %180 : vector<16x64xf32>
    %cst_58 = arith.constant 0.797884583 : f32
    %182 = vector.broadcast %cst_58 : f32 to vector<16x64xf32>
    %183 = arith.mulf %182, %181 : vector<16x64xf32>
    %184 = math.tanh %183 : vector<16x64xf32>
    %cst_59 = arith.constant 1.000000e+00 : f32
    %185 = vector.broadcast %cst_59 : f32 to vector<16x64xf32>
    %186 = arith.addf %185, %184 : vector<16x64xf32>
    %cst_60 = arith.constant 5.000000e-01 : f32
    %187 = vector.broadcast %cst_60 : f32 to vector<16x64xf32>
    %188 = arith.mulf %187, %186 : vector<16x64xf32>
    %189 = arith.mulf %176, %188 : vector<16x64xf32>
    %c80 = arith.constant 80 : index
    %c0_61 = arith.constant 0 : index
    %190 = vector.load %arg3[%c80, %c0_61] : memref<208x32xf32, #tpu.memory_space<vmem>>, vector<64x32xf32>
    %cst_62 = arith.constant dense<0.000000e+00> : vector<16x32xf32>
    %191 = tpu.matmul %189, %190, %cst_62 {dimension_numbers = #tpu.dot_dimension_numbers<[1], [0], [0], [1], [0, 0, 1, 1], [], []>} : vector<16x64xf32>, vector<64x32xf32>, vector<16x32xf32> -> vector<16x32xf32>
    %c3 = arith.constant 3 : index
    %c0_63 = arith.constant 0 : index
    %192 = vector.load %arg4[%c3, %c0_63] : memref<19x96xf32, #tpu.memory_space<vmem>>, vector<1x32xf32>
    %193 = vector.broadcast %192 : vector<1x32xf32> to vector<16x32xf32>
    %194 = arith.addf %191, %193 : vector<16x32xf32>
    %195 = arith.addf %194, %172 : vector<16x32xf32>
    %c6 = arith.constant 6 : index
    %c0_64 = arith.constant 0 : index
    %196 = vector.load %arg4[%c6, %c0_64] : memref<19x96xf32, #tpu.memory_space<vmem>>, vector<1x32xf32>
    %c7 = arith.constant 7 : index
    %c0_65 = arith.constant 0 : index
    %197 = vector.load %arg4[%c7, %c0_65] : memref<19x96xf32, #tpu.memory_space<vmem>>, vector<1x32xf32>
    %cst_66 = arith.constant dense<0.000000e+00> : vector<16xf32>
    %198 = vector.multi_reduction <add>, %195, %cst_66 [1] : vector<16x32xf32> to vector<16xf32>
    %199 = vector.shape_cast %198 : vector<16xf32> to vector<16x1xf32>
    %cst_67 = arith.constant 3.200000e+01 : f32
    %200 = vector.broadcast %cst_67 : f32 to vector<16x1xf32>
    %201 = arith.divf %199, %200 : vector<16x1xf32>
    %202 = vector.broadcast %201 : vector<16x1xf32> to vector<16x32xf32>
    %203 = arith.subf %195, %202 : vector<16x32xf32>
    %204 = arith.mulf %203, %203 : vector<16x32xf32>
    %cst_68 = arith.constant dense<0.000000e+00> : vector<16xf32>
    %205 = vector.multi_reduction <add>, %204, %cst_68 [1] : vector<16x32xf32> to vector<16xf32>
    %206 = vector.shape_cast %205 : vector<16xf32> to vector<16x1xf32>
    %cst_69 = arith.constant 3.200000e+01 : f32
    %207 = vector.broadcast %cst_69 : f32 to vector<16x1xf32>
    %208 = arith.divf %206, %207 : vector<16x1xf32>
    %209 = vector.broadcast %201 : vector<16x1xf32> to vector<16x32xf32>
    %210 = arith.subf %195, %209 : vector<16x32xf32>
    %cst_70 = arith.constant 9.99999996E-13 : f32
    %211 = vector.broadcast %cst_70 : f32 to vector<16x1xf32>
    %212 = arith.addf %208, %211 : vector<16x1xf32>
    %213 = math.rsqrt %212 : vector<16x1xf32>
    %214 = vector.broadcast %213 : vector<16x1xf32> to vector<16x32xf32>
    %215 = arith.mulf %210, %214 : vector<16x32xf32>
    %216 = vector.broadcast %196 : vector<1x32xf32> to vector<16x32xf32>
    %217 = arith.mulf %215, %216 : vector<16x32xf32>
    %218 = vector.broadcast %197 : vector<1x32xf32> to vector<16x32xf32>
    %219 = arith.addf %217, %218 : vector<16x32xf32>
    %c1_71 = arith.constant 1 : index
    %c0_72 = arith.constant 0 : index
    %c0_73 = arith.constant 0 : index
    %220 = vector.load %arg2[%c1_71, %c0_72, %c0_73] : memref<2x32x192xf32, #tpu.memory_space<vmem>>, vector<1x32x192xf32>
    %221 = vector.shape_cast %220 : vector<1x32x192xf32> to vector<32x192xf32>
    %222 = vector.extract_strided_slice %221 {offsets = [0, 0], sizes = [32, 96], strides = [1, 1]} : vector<32x192xf32> to vector<32x96xf32>
    %223 = vector.extract_strided_slice %221 {offsets = [0, 96], sizes = [32, 32], strides = [1, 1]} : vector<32x192xf32> to vector<32x32xf32>
    %224 = vector.extract_strided_slice %221 {offsets = [0, 128], sizes = [32, 64], strides = [1, 1]} : vector<32x192xf32> to vector<32x64xf32>
    %cst_74 = arith.constant dense<0.000000e+00> : vector<16x96xf32>
    %225 = tpu.matmul %219, %222, %cst_74 {dimension_numbers = #tpu.dot_dimension_numbers<[1], [0], [0], [1], [0, 0, 1, 1], [], []>} : vector<16x32xf32>, vector<32x96xf32>, vector<16x96xf32> -> vector<16x96xf32>
    %c8 = arith.constant 8 : index
    %c0_75 = arith.constant 0 : index
    %226 = vector.load %arg4[%c8, %c0_75] : memref<19x96xf32, #tpu.memory_space<vmem>>, vector<1x96xf32>
    %227 = vector.broadcast %226 : vector<1x96xf32> to vector<16x96xf32>
    %228 = arith.addf %225, %227 : vector<16x96xf32>
    %229 = vector.shape_cast %228 : vector<16x96xf32> to vector<2x8x96xf32>
    %cst_76 = arith.constant 0.000000e+00 : f32
    %230 = vector.broadcast %cst_76 : f32 to vector<16x32xf32>
    %231 = vector.extract_strided_slice %229 {offsets = [0, 0, 0], sizes = [2, 8, 8], strides = [1, 1, 1]} : vector<2x8x96xf32> to vector<2x8x8xf32>
    %232 = vector.extract_strided_slice %229 {offsets = [0, 0, 32], sizes = [2, 8, 8], strides = [1, 1, 1]} : vector<2x8x96xf32> to vector<2x8x8xf32>
    %233 = vector.extract_strided_slice %229 {offsets = [0, 0, 64], sizes = [2, 8, 8], strides = [1, 1, 1]} : vector<2x8x96xf32> to vector<2x8x8xf32>
    "tpu.trace_start"() <{level = 10 : i32, message = "bqd,bkd->bqk"}> : () -> ()
    %cst_77 = arith.constant dense<0.000000e+00> : vector<2x8x8xf32>
    %234 = tpu.matmul %231, %232, %cst_77 {dimension_numbers = #tpu.dot_dimension_numbers<[2], [2], [1], [1], [0, 0, 0, 1, 1, 1], [0], [0]>} : vector<2x8x8xf32>, vector<2x8x8xf32>, vector<2x8x8xf32> -> vector<2x8x8xf32>
    "tpu.trace_stop"() : () -> ()
    %cst_78 = arith.constant 0.353553385 : f32
    %235 = vector.broadcast %cst_78 : f32 to vector<2x8x8xf32>
    %236 = arith.mulf %234, %235 : vector<2x8x8xf32>
    %237 = vector.broadcast %41 : vector<2x1x8xf32> to vector<2x8x8xf32>
    %238 = arith.addf %236, %237 : vector<2x8x8xf32>
    %cst_79 = arith.constant dense<0xFF800000> : vector<2x8xf32>
    %239 = vector.multi_reduction <maximumf>, %238, %cst_79 [2] : vector<2x8x8xf32> to vector<2x8xf32>
    %240 = vector.shape_cast %239 : vector<2x8xf32> to vector<2x8x1xf32>
    %241 = vector.broadcast %240 : vector<2x8x1xf32> to vector<2x8x8xf32>
    %242 = arith.subf %238, %241 : vector<2x8x8xf32>
    %243 = math.exp %242 : vector<2x8x8xf32>
    %cst_80 = arith.constant dense<0.000000e+00> : vector<2x8xf32>
    %244 = vector.multi_reduction <add>, %243, %cst_80 [2] : vector<2x8x8xf32> to vector<2x8xf32>
    %245 = vector.shape_cast %244 : vector<2x8xf32> to vector<2x8x1xf32>
    %246 = tpu.reciprocal %245 {approx = true} : vector<2x8x1xf32> -> vector<2x8x1xf32>
    %247 = vector.broadcast %246 : vector<2x8x1xf32> to vector<2x8x8xf32>
    %248 = arith.mulf %243, %247 : vector<2x8x8xf32>
    "tpu.trace_start"() <{level = 10 : i32, message = "bqk,bkd->bqd"}> : () -> ()
    %cst_81 = arith.constant dense<0.000000e+00> : vector<2x8x8xf32>
    %249 = tpu.matmul %248, %233, %cst_81 {dimension_numbers = #tpu.dot_dimension_numbers<[2], [1], [1], [2], [0, 0, 0, 1, 1, 2], [0], [0]>} : vector<2x8x8xf32>, vector<2x8x8xf32>, vector<2x8x8xf32> -> vector<2x8x8xf32>
    "tpu.trace_stop"() : () -> ()
    %250 = vector.shape_cast %249 : vector<2x8x8xf32> to vector<16x8xf32>
    %251 = vector.extract_strided_slice %223 {offsets = [0, 0], sizes = [8, 32], strides = [1, 1]} : vector<32x32xf32> to vector<8x32xf32>
    %cst_82 = arith.constant dense<0.000000e+00> : vector<16x32xf32>
    %252 = tpu.matmul %250, %251, %cst_82 {dimension_numbers = #tpu.dot_dimension_numbers<[1], [0], [0], [1], [0, 0, 1, 1], [], []>} : vector<16x8xf32>, vector<8x32xf32>, vector<16x32xf32> -> vector<16x32xf32>
    %253 = arith.addf %230, %252 : vector<16x32xf32>
    %254 = vector.extract_strided_slice %229 {offsets = [0, 0, 8], sizes = [2, 8, 8], strides = [1, 1, 1]} : vector<2x8x96xf32> to vector<2x8x8xf32>
    %255 = vector.extract_strided_slice %229 {offsets = [0, 0, 40], sizes = [2, 8, 8], strides = [1, 1, 1]} : vector<2x8x96xf32> to vector<2x8x8xf32>
    %256 = vector.extract_strided_slice %229 {offsets = [0, 0, 72], sizes = [2, 8, 8], strides = [1, 1, 1]} : vector<2x8x96xf32> to vector<2x8x8xf32>
    "tpu.trace_start"() <{level = 10 : i32, message = "bqd,bkd->bqk"}> : () -> ()
    %cst_83 = arith.constant dense<0.000000e+00> : vector<2x8x8xf32>
    %257 = tpu.matmul %254, %255, %cst_83 {dimension_numbers = #tpu.dot_dimension_numbers<[2], [2], [1], [1], [0, 0, 0, 1, 1, 1], [0], [0]>} : vector<2x8x8xf32>, vector<2x8x8xf32>, vector<2x8x8xf32> -> vector<2x8x8xf32>
    "tpu.trace_stop"() : () -> ()
    %cst_84 = arith.constant 0.353553385 : f32
    %258 = vector.broadcast %cst_84 : f32 to vector<2x8x8xf32>
    %259 = arith.mulf %257, %258 : vector<2x8x8xf32>
    %260 = vector.broadcast %41 : vector<2x1x8xf32> to vector<2x8x8xf32>
    %261 = arith.addf %259, %260 : vector<2x8x8xf32>
    %cst_85 = arith.constant dense<0xFF800000> : vector<2x8xf32>
    %262 = vector.multi_reduction <maximumf>, %261, %cst_85 [2] : vector<2x8x8xf32> to vector<2x8xf32>
    %263 = vector.shape_cast %262 : vector<2x8xf32> to vector<2x8x1xf32>
    %264 = vector.broadcast %263 : vector<2x8x1xf32> to vector<2x8x8xf32>
    %265 = arith.subf %261, %264 : vector<2x8x8xf32>
    %266 = math.exp %265 : vector<2x8x8xf32>
    %cst_86 = arith.constant dense<0.000000e+00> : vector<2x8xf32>
    %267 = vector.multi_reduction <add>, %266, %cst_86 [2] : vector<2x8x8xf32> to vector<2x8xf32>
    %268 = vector.shape_cast %267 : vector<2x8xf32> to vector<2x8x1xf32>
    %269 = tpu.reciprocal %268 {approx = true} : vector<2x8x1xf32> -> vector<2x8x1xf32>
    %270 = vector.broadcast %269 : vector<2x8x1xf32> to vector<2x8x8xf32>
    %271 = arith.mulf %266, %270 : vector<2x8x8xf32>
    "tpu.trace_start"() <{level = 10 : i32, message = "bqk,bkd->bqd"}> : () -> ()
    %cst_87 = arith.constant dense<0.000000e+00> : vector<2x8x8xf32>
    %272 = tpu.matmul %271, %256, %cst_87 {dimension_numbers = #tpu.dot_dimension_numbers<[2], [1], [1], [2], [0, 0, 0, 1, 1, 2], [0], [0]>} : vector<2x8x8xf32>, vector<2x8x8xf32>, vector<2x8x8xf32> -> vector<2x8x8xf32>
    "tpu.trace_stop"() : () -> ()
    %273 = vector.shape_cast %272 : vector<2x8x8xf32> to vector<16x8xf32>
    %274 = vector.extract_strided_slice %223 {offsets = [8, 0], sizes = [8, 32], strides = [1, 1]} : vector<32x32xf32> to vector<8x32xf32>
    %cst_88 = arith.constant dense<0.000000e+00> : vector<16x32xf32>
    %275 = tpu.matmul %273, %274, %cst_88 {dimension_numbers = #tpu.dot_dimension_numbers<[1], [0], [0], [1], [0, 0, 1, 1], [], []>} : vector<16x8xf32>, vector<8x32xf32>, vector<16x32xf32> -> vector<16x32xf32>
    %276 = arith.addf %253, %275 : vector<16x32xf32>
    %277 = vector.extract_strided_slice %229 {offsets = [0, 0, 16], sizes = [2, 8, 8], strides = [1, 1, 1]} : vector<2x8x96xf32> to vector<2x8x8xf32>
    %278 = vector.extract_strided_slice %229 {offsets = [0, 0, 48], sizes = [2, 8, 8], strides = [1, 1, 1]} : vector<2x8x96xf32> to vector<2x8x8xf32>
    %279 = vector.extract_strided_slice %229 {offsets = [0, 0, 80], sizes = [2, 8, 8], strides = [1, 1, 1]} : vector<2x8x96xf32> to vector<2x8x8xf32>
    "tpu.trace_start"() <{level = 10 : i32, message = "bqd,bkd->bqk"}> : () -> ()
    %cst_89 = arith.constant dense<0.000000e+00> : vector<2x8x8xf32>
    %280 = tpu.matmul %277, %278, %cst_89 {dimension_numbers = #tpu.dot_dimension_numbers<[2], [2], [1], [1], [0, 0, 0, 1, 1, 1], [0], [0]>} : vector<2x8x8xf32>, vector<2x8x8xf32>, vector<2x8x8xf32> -> vector<2x8x8xf32>
    "tpu.trace_stop"() : () -> ()
    %cst_90 = arith.constant 0.353553385 : f32
    %281 = vector.broadcast %cst_90 : f32 to vector<2x8x8xf32>
    %282 = arith.mulf %280, %281 : vector<2x8x8xf32>
    %283 = vector.broadcast %41 : vector<2x1x8xf32> to vector<2x8x8xf32>
    %284 = arith.addf %282, %283 : vector<2x8x8xf32>
    %cst_91 = arith.constant dense<0xFF800000> : vector<2x8xf32>
    %285 = vector.multi_reduction <maximumf>, %284, %cst_91 [2] : vector<2x8x8xf32> to vector<2x8xf32>
    %286 = vector.shape_cast %285 : vector<2x8xf32> to vector<2x8x1xf32>
    %287 = vector.broadcast %286 : vector<2x8x1xf32> to vector<2x8x8xf32>
    %288 = arith.subf %284, %287 : vector<2x8x8xf32>
    %289 = math.exp %288 : vector<2x8x8xf32>
    %cst_92 = arith.constant dense<0.000000e+00> : vector<2x8xf32>
    %290 = vector.multi_reduction <add>, %289, %cst_92 [2] : vector<2x8x8xf32> to vector<2x8xf32>
    %291 = vector.shape_cast %290 : vector<2x8xf32> to vector<2x8x1xf32>
    %292 = tpu.reciprocal %291 {approx = true} : vector<2x8x1xf32> -> vector<2x8x1xf32>
    %293 = vector.broadcast %292 : vector<2x8x1xf32> to vector<2x8x8xf32>
    %294 = arith.mulf %289, %293 : vector<2x8x8xf32>
    "tpu.trace_start"() <{level = 10 : i32, message = "bqk,bkd->bqd"}> : () -> ()
    %cst_93 = arith.constant dense<0.000000e+00> : vector<2x8x8xf32>
    %295 = tpu.matmul %294, %279, %cst_93 {dimension_numbers = #tpu.dot_dimension_numbers<[2], [1], [1], [2], [0, 0, 0, 1, 1, 2], [0], [0]>} : vector<2x8x8xf32>, vector<2x8x8xf32>, vector<2x8x8xf32> -> vector<2x8x8xf32>
    "tpu.trace_stop"() : () -> ()
    %296 = vector.shape_cast %295 : vector<2x8x8xf32> to vector<16x8xf32>
    %297 = vector.extract_strided_slice %223 {offsets = [16, 0], sizes = [8, 32], strides = [1, 1]} : vector<32x32xf32> to vector<8x32xf32>
    %cst_94 = arith.constant dense<0.000000e+00> : vector<16x32xf32>
    %298 = tpu.matmul %296, %297, %cst_94 {dimension_numbers = #tpu.dot_dimension_numbers<[1], [0], [0], [1], [0, 0, 1, 1], [], []>} : vector<16x8xf32>, vector<8x32xf32>, vector<16x32xf32> -> vector<16x32xf32>
    %299 = arith.addf %276, %298 : vector<16x32xf32>
    %300 = vector.extract_strided_slice %229 {offsets = [0, 0, 24], sizes = [2, 8, 8], strides = [1, 1, 1]} : vector<2x8x96xf32> to vector<2x8x8xf32>
    %301 = vector.extract_strided_slice %229 {offsets = [0, 0, 56], sizes = [2, 8, 8], strides = [1, 1, 1]} : vector<2x8x96xf32> to vector<2x8x8xf32>
    %302 = vector.extract_strided_slice %229 {offsets = [0, 0, 88], sizes = [2, 8, 8], strides = [1, 1, 1]} : vector<2x8x96xf32> to vector<2x8x8xf32>
    "tpu.trace_start"() <{level = 10 : i32, message = "bqd,bkd->bqk"}> : () -> ()
    %cst_95 = arith.constant dense<0.000000e+00> : vector<2x8x8xf32>
    %303 = tpu.matmul %300, %301, %cst_95 {dimension_numbers = #tpu.dot_dimension_numbers<[2], [2], [1], [1], [0, 0, 0, 1, 1, 1], [0], [0]>} : vector<2x8x8xf32>, vector<2x8x8xf32>, vector<2x8x8xf32> -> vector<2x8x8xf32>
    "tpu.trace_stop"() : () -> ()
    %cst_96 = arith.constant 0.353553385 : f32
    %304 = vector.broadcast %cst_96 : f32 to vector<2x8x8xf32>
    %305 = arith.mulf %303, %304 : vector<2x8x8xf32>
    %306 = vector.broadcast %41 : vector<2x1x8xf32> to vector<2x8x8xf32>
    %307 = arith.addf %305, %306 : vector<2x8x8xf32>
    %cst_97 = arith.constant dense<0xFF800000> : vector<2x8xf32>
    %308 = vector.multi_reduction <maximumf>, %307, %cst_97 [2] : vector<2x8x8xf32> to vector<2x8xf32>
    %309 = vector.shape_cast %308 : vector<2x8xf32> to vector<2x8x1xf32>
    %310 = vector.broadcast %309 : vector<2x8x1xf32> to vector<2x8x8xf32>
    %311 = arith.subf %307, %310 : vector<2x8x8xf32>
    %312 = math.exp %311 : vector<2x8x8xf32>
    %cst_98 = arith.constant dense<0.000000e+00> : vector<2x8xf32>
    %313 = vector.multi_reduction <add>, %312, %cst_98 [2] : vector<2x8x8xf32> to vector<2x8xf32>
    %314 = vector.shape_cast %313 : vector<2x8xf32> to vector<2x8x1xf32>
    %315 = tpu.reciprocal %314 {approx = true} : vector<2x8x1xf32> -> vector<2x8x1xf32>
    %316 = vector.broadcast %315 : vector<2x8x1xf32> to vector<2x8x8xf32>
    %317 = arith.mulf %312, %316 : vector<2x8x8xf32>
    "tpu.trace_start"() <{level = 10 : i32, message = "bqk,bkd->bqd"}> : () -> ()
    %cst_99 = arith.constant dense<0.000000e+00> : vector<2x8x8xf32>
    %318 = tpu.matmul %317, %302, %cst_99 {dimension_numbers = #tpu.dot_dimension_numbers<[2], [1], [1], [2], [0, 0, 0, 1, 1, 2], [0], [0]>} : vector<2x8x8xf32>, vector<2x8x8xf32>, vector<2x8x8xf32> -> vector<2x8x8xf32>
    "tpu.trace_stop"() : () -> ()
    %319 = vector.shape_cast %318 : vector<2x8x8xf32> to vector<16x8xf32>
    %320 = vector.extract_strided_slice %223 {offsets = [24, 0], sizes = [8, 32], strides = [1, 1]} : vector<32x32xf32> to vector<8x32xf32>
    %cst_100 = arith.constant dense<0.000000e+00> : vector<16x32xf32>
    %321 = tpu.matmul %319, %320, %cst_100 {dimension_numbers = #tpu.dot_dimension_numbers<[1], [0], [0], [1], [0, 0, 1, 1], [], []>} : vector<16x8xf32>, vector<8x32xf32>, vector<16x32xf32> -> vector<16x32xf32>
    %322 = arith.addf %299, %321 : vector<16x32xf32>
    %c9 = arith.constant 9 : index
    %c0_101 = arith.constant 0 : index
    %323 = vector.load %arg4[%c9, %c0_101] : memref<19x96xf32, #tpu.memory_space<vmem>>, vector<1x32xf32>
    %324 = vector.broadcast %323 : vector<1x32xf32> to vector<16x32xf32>
    %325 = arith.addf %322, %324 : vector<16x32xf32>
    %326 = arith.addf %325, %219 : vector<16x32xf32>
    %c12 = arith.constant 12 : index
    %c0_102 = arith.constant 0 : index
    %327 = vector.load %arg4[%c12, %c0_102] : memref<19x96xf32, #tpu.memory_space<vmem>>, vector<1x32xf32>
    %c13 = arith.constant 13 : index
    %c0_103 = arith.constant 0 : index
    %328 = vector.load %arg4[%c13, %c0_103] : memref<19x96xf32, #tpu.memory_space<vmem>>, vector<1x32xf32>
    %cst_104 = arith.constant dense<0.000000e+00> : vector<16xf32>
    %329 = vector.multi_reduction <add>, %326, %cst_104 [1] : vector<16x32xf32> to vector<16xf32>
    %330 = vector.shape_cast %329 : vector<16xf32> to vector<16x1xf32>
    %cst_105 = arith.constant 3.200000e+01 : f32
    %331 = vector.broadcast %cst_105 : f32 to vector<16x1xf32>
    %332 = arith.divf %330, %331 : vector<16x1xf32>
    %333 = vector.broadcast %332 : vector<16x1xf32> to vector<16x32xf32>
    %334 = arith.subf %326, %333 : vector<16x32xf32>
    %335 = arith.mulf %334, %334 : vector<16x32xf32>
    %cst_106 = arith.constant dense<0.000000e+00> : vector<16xf32>
    %336 = vector.multi_reduction <add>, %335, %cst_106 [1] : vector<16x32xf32> to vector<16xf32>
    %337 = vector.shape_cast %336 : vector<16xf32> to vector<16x1xf32>
    %cst_107 = arith.constant 3.200000e+01 : f32
    %338 = vector.broadcast %cst_107 : f32 to vector<16x1xf32>
    %339 = arith.divf %337, %338 : vector<16x1xf32>
    %340 = vector.broadcast %332 : vector<16x1xf32> to vector<16x32xf32>
    %341 = arith.subf %326, %340 : vector<16x32xf32>
    %cst_108 = arith.constant 9.99999996E-13 : f32
    %342 = vector.broadcast %cst_108 : f32 to vector<16x1xf32>
    %343 = arith.addf %339, %342 : vector<16x1xf32>
    %344 = math.rsqrt %343 : vector<16x1xf32>
    %345 = vector.broadcast %344 : vector<16x1xf32> to vector<16x32xf32>
    %346 = arith.mulf %341, %345 : vector<16x32xf32>
    %347 = vector.broadcast %327 : vector<1x32xf32> to vector<16x32xf32>
    %348 = arith.mulf %346, %347 : vector<16x32xf32>
    %349 = vector.broadcast %328 : vector<1x32xf32> to vector<16x32xf32>
    %350 = arith.addf %348, %349 : vector<16x32xf32>
    %cst_109 = arith.constant dense<0.000000e+00> : vector<16x64xf32>
    %351 = tpu.matmul %350, %224, %cst_109 {dimension_numbers = #tpu.dot_dimension_numbers<[1], [0], [0], [1], [0, 0, 1, 1], [], []>} : vector<16x32xf32>, vector<32x64xf32>, vector<16x64xf32> -> vector<16x64xf32>
    %c10 = arith.constant 10 : index
    %c0_110 = arith.constant 0 : index
    %352 = vector.load %arg4[%c10, %c0_110] : memref<19x96xf32, #tpu.memory_space<vmem>>, vector<1x64xf32>
    %353 = vector.broadcast %352 : vector<1x64xf32> to vector<16x64xf32>
    %354 = arith.addf %351, %353 : vector<16x64xf32>
    %355 = arith.mulf %354, %354 : vector<16x64xf32>
    %356 = arith.mulf %354, %355 : vector<16x64xf32>
    %cst_111 = arith.constant 4.471500e-02 : f32
    %357 = vector.broadcast %cst_111 : f32 to vector<16x64xf32>
    %358 = arith.mulf %357, %356 : vector<16x64xf32>
    %359 = arith.addf %354, %358 : vector<16x64xf32>
    %cst_112 = arith.constant 0.797884583 : f32
    %360 = vector.broadcast %cst_112 : f32 to vector<16x64xf32>
    %361 = arith.mulf %360, %359 : vector<16x64xf32>
    %362 = math.tanh %361 : vector<16x64xf32>
    %cst_113 = arith.constant 1.000000e+00 : f32
    %363 = vector.broadcast %cst_113 : f32 to vector<16x64xf32>
    %364 = arith.addf %363, %362 : vector<16x64xf32>
    %cst_114 = arith.constant 5.000000e-01 : f32
    %365 = vector.broadcast %cst_114 : f32 to vector<16x64xf32>
    %366 = arith.mulf %365, %364 : vector<16x64xf32>
    %367 = arith.mulf %354, %366 : vector<16x64xf32>
    %c144 = arith.constant 144 : index
    %c0_115 = arith.constant 0 : index
    %368 = vector.load %arg3[%c144, %c0_115] : memref<208x32xf32, #tpu.memory_space<vmem>>, vector<64x32xf32>
    %cst_116 = arith.constant dense<0.000000e+00> : vector<16x32xf32>
    %369 = tpu.matmul %367, %368, %cst_116 {dimension_numbers = #tpu.dot_dimension_numbers<[1], [0], [0], [1], [0, 0, 1, 1], [], []>} : vector<16x64xf32>, vector<64x32xf32>, vector<16x32xf32> -> vector<16x32xf32>
    %c11 = arith.constant 11 : index
    %c0_117 = arith.constant 0 : index
    %370 = vector.load %arg4[%c11, %c0_117] : memref<19x96xf32, #tpu.memory_space<vmem>>, vector<1x32xf32>
    %371 = vector.broadcast %370 : vector<1x32xf32> to vector<16x32xf32>
    %372 = arith.addf %369, %371 : vector<16x32xf32>
    %373 = arith.addf %372, %350 : vector<16x32xf32>
    %c14 = arith.constant 14 : index
    %c0_118 = arith.constant 0 : index
    %374 = vector.load %arg4[%c14, %c0_118] : memref<19x96xf32, #tpu.memory_space<vmem>>, vector<1x32xf32>
    %c15 = arith.constant 15 : index
    %c0_119 = arith.constant 0 : index
    %375 = vector.load %arg4[%c15, %c0_119] : memref<19x96xf32, #tpu.memory_space<vmem>>, vector<1x32xf32>
    %cst_120 = arith.constant dense<0.000000e+00> : vector<16xf32>
    %376 = vector.multi_reduction <add>, %373, %cst_120 [1] : vector<16x32xf32> to vector<16xf32>
    %377 = vector.shape_cast %376 : vector<16xf32> to vector<16x1xf32>
    %cst_121 = arith.constant 3.200000e+01 : f32
    %378 = vector.broadcast %cst_121 : f32 to vector<16x1xf32>
    %379 = arith.divf %377, %378 : vector<16x1xf32>
    %380 = vector.broadcast %379 : vector<16x1xf32> to vector<16x32xf32>
    %381 = arith.subf %373, %380 : vector<16x32xf32>
    %382 = arith.mulf %381, %381 : vector<16x32xf32>
    %cst_122 = arith.constant dense<0.000000e+00> : vector<16xf32>
    %383 = vector.multi_reduction <add>, %382, %cst_122 [1] : vector<16x32xf32> to vector<16xf32>
    %384 = vector.shape_cast %383 : vector<16xf32> to vector<16x1xf32>
    %cst_123 = arith.constant 3.200000e+01 : f32
    %385 = vector.broadcast %cst_123 : f32 to vector<16x1xf32>
    %386 = arith.divf %384, %385 : vector<16x1xf32>
    %387 = vector.broadcast %379 : vector<16x1xf32> to vector<16x32xf32>
    %388 = arith.subf %373, %387 : vector<16x32xf32>
    %cst_124 = arith.constant 9.99999996E-13 : f32
    %389 = vector.broadcast %cst_124 : f32 to vector<16x1xf32>
    %390 = arith.addf %386, %389 : vector<16x1xf32>
    %391 = math.rsqrt %390 : vector<16x1xf32>
    %392 = vector.broadcast %391 : vector<16x1xf32> to vector<16x32xf32>
    %393 = arith.mulf %388, %392 : vector<16x32xf32>
    %394 = vector.broadcast %374 : vector<1x32xf32> to vector<16x32xf32>
    %395 = arith.mulf %393, %394 : vector<16x32xf32>
    %396 = vector.broadcast %375 : vector<1x32xf32> to vector<16x32xf32>
    %397 = arith.addf %395, %396 : vector<16x32xf32>
    %398 = vector.shape_cast %397 : vector<16x32xf32> to vector<2x8x32xf32>
    %399 = vector.shape_cast %36 : vector<2x8xf32> to vector<2x8x1xf32>
    %400 = vector.broadcast %399 : vector<2x8x1xf32> to vector<2x8x32xf32>
    %401 = arith.mulf %398, %400 : vector<2x8x32xf32>
    %cst_125 = arith.constant dense<0.000000e+00> : vector<2x32xf32>
    %402 = vector.multi_reduction <add>, %401, %cst_125 [1] : vector<2x8x32xf32> to vector<2x32xf32>
    %cst_126 = arith.constant dense<0.000000e+00> : vector<2xf32>
    %403 = vector.multi_reduction <add>, %36, %cst_126 [1] : vector<2x8xf32> to vector<2xf32>
    %404 = vector.shape_cast %403 : vector<2xf32> to vector<2x1xf32>
    %cst_127 = arith.constant 1.000000e+00 : f32
    %405 = vector.broadcast %cst_127 : f32 to vector<2x1xf32>
    %406 = arith.maximumf %404, %405 : vector<2x1xf32>
    %407 = vector.broadcast %406 : vector<2x1xf32> to vector<2x32xf32>
    %408 = arith.divf %402, %407 : vector<2x32xf32>
    %c18 = arith.constant 18 : index
    %c0_128 = arith.constant 0 : index
    %409 = vector.load %arg4[%c18, %c0_128] : memref<19x96xf32, #tpu.memory_space<vmem>>, vector<1x32xf32>
    %c18_129 = arith.constant 18 : index
    %c32 = arith.constant 32 : index
    %410 = vector.load %arg4[%c18_129, %c32] : memref<19x96xf32, #tpu.memory_space<vmem>>, vector<1x1xf32>
    "tpu.trace_start"() <{level = 10 : i32, message = "ch,bh->cb"}> : () -> ()
    %cst_130 = arith.constant dense<0.000000e+00> : vector<1x2xf32>
    %411 = tpu.matmul %409, %408, %cst_130 {dimension_numbers = #tpu.dot_dimension_numbers<[1], [1], [0], [0], [0, 0, 1, 0], [], []>} : vector<1x32xf32>, vector<2x32xf32>, vector<1x2xf32> -> vector<1x2xf32>
    "tpu.trace_stop"() : () -> ()
    %412 = vector.broadcast %410 : vector<1x1xf32> to vector<1x2xf32>
    %413 = arith.addf %411, %412 : vector<1x2xf32>
    %c0_131 = arith.constant 0 : index
    %c0_132 = arith.constant 0 : index
    %414 = vector.load %arg5[%c0_131, %c0_132] : memref<1x2xf32, #tpu.memory_space<vmem>>, vector<1x2xf32>
    tpu.vector_store %arg5[%c0_131, %c0_132], %413 {strides = array<i32>} : memref<1x2xf32, #tpu.memory_space<vmem>>, vector<1x2xf32>,
    return
  }
}

</mosaic_0001>

<bundles_post_ra>
// kernel: tpu_custom_call.1
= control target key start
LH: loop header
LB: loop body
LE: loop exit
PB: predicated region body
PF: predicated region fallthrough
CT: control target
= control target key end

     0   :  { %v5297_v3 = vmov 0   ;;  %v21_v7 = vlaneseq  ;;  %v5298_v10 = vmov 1966171168   ;;  %s6003_s0 = inlined_call_operand.vmem [shape: s32[16,2], index: 0, kind: input, shape index: {}]   ;;  %s6004_s1 = inlined_call_operand.vmem [shape: f32[2,8], index: 1, kind: input, shape index: {}]   ;;  %s6005_s2 = inlined_call_operand.vmem [shape: f32[2,32,192], index: 2, kind: input, shape index: {}]   ;;  %s6006_s3 = inlined_call_operand.vmem [shape: f32[208,32], index: 3, kind: input, shape index: {}]   ;;  %s6007_s4 = inlined_call_operand.vmem [shape: f32[19,96], index: 4, kind: input, shape index: {}]   ;;  %s6008_s5 = inlined_call_operand.hbm [shape: f32[1,2], index: 5, kind: output, shape index: {}]  }
   0x1   :  { %v24_v0 = vld [vmem:[%s6003_s0 + $0x8] sm:$0xff]  ;;  %v23_v1 = vld [vmem:[%s6003_s0] sm:$0xff]  ;;  %5172 = vset.pattern.permute.xlu1 %v5297_v3  ;;  %5170 = vset.pattern.permute.xlu0 %v5297_v3  ;;  %v49_v5 = vld [vmem:[%s6006_s3 + $0x10] sm:$0xff]  ;;  %v185_v11 = vunpack.c.l.s4 %v5298_v10 }
   0x2   :  { %v47_v2 = vld [vmem:[%s6006_s3] sm:$0xff]  ;;  %v48_v4 = vld [vmem:[%s6006_s3 + $0x8] sm:$0xff]  ;;  %v50_v6 = vld [vmem:[%s6006_s3 + $0x18] sm:$0xff]  ;;  %29 = vperm.xlu1 %5172, %v24_v0   ;;  %26 = vperm.xlu0 %5170, %v23_v1   ;;  %v5373_v14 = vshrl.u32 %v21_v7, 7 }
   0x3   :  { %v5055_v8 = vpack.c.bf16 %v48_v4, %v47_v2  ;;  %v181_v9 = vld [vmem:[%s6004_s1] sm:$0x3]  ;;  %v52_v13 = vld [vmem:[%s6006_s3 + $0x28] sm:$0xff] }
   0x4   :  { %v51_v12 = vld [vmem:[%s6006_s3 + $0x20] sm:$0xff] }
   0x5   :  { %10 = vsyncpa [#allocation3], 0  ;;  %5056 = vmatprep.subr.bf16.mxu0 %v5055_v8  ;;  %v5059_v15 = vpack.c.bf16 %v50_v6, %v49_v5  ;;  %v182_v16 = vsub.f32 1.0, %v181_v9  ;;  %v186_v17 = vunpack.c.0.s8 %v185_v11  ;;  %v5299_v18 = vmov 1   ;;  %v53_v21 = vld [vmem:[%s6006_s3 + $0x30] sm:$0xff]  ;;  %v54_v22 = vld [vmem:[%s6006_s3 + $0x38] sm:$0xff] }
   0x6   :  { %5058 = vmatpush3.bf16.msra.mxu0 %v5055_v8  ;;  %5173 = vset.pattern.permute.xlu1 %v5299_v18  ;;  %v5063_v19 = vpack.c.bf16 %v52_v13, %v51_v12  ;;  %v5067_v25 = vpack.c.bf16 %v54_v22, %v53_v21  ;;  %v55_v26 = vld [vmem:[%s6006_s3 + $0x40] sm:$0xff]  ;;  %v56_v27 = vld [vmem:[%s6006_s3 + $0x48] sm:$0xff]  ;;  %v5300_v29 = vmov 0.0   ;;  %v22_v32 = vand.u32 127, %v21_v7  ;;  %v5410_v52 = vld [vmem:[%s6005_s2 + $0x10] sm:$0xff]  ;;  %s5302_s6 = smov 96  }
   0x7   :  { %5171 = vset.pattern.permute.xlu0 %v5299_v18  ;;  %v5376_v20 = vsub.s32 %v186_v17, %v5373_v14  ;;  %37 = vperm.xlu1 %5173, %v24_v0   ;;  %v5071_v28 = vpack.c.bf16 %v56_v27, %v55_v26  ;;  %vm57_vm5 = vcmask 654336   ;;  %vm141_vm7 = vcmask 261120   ;;  %v5405_v51 = vld [vmem:[%s6005_s2] sm:$0xff]  ;;  %v5422_v55 = vld [vmem:[%s6005_s2 + $0x30] sm:$0xff]  ;;  %s5303_s7 = smov 88   ;;  %s5304_s8 = smov 120  }
   0x8   :  { %34 = vperm.xlu0 %5171, %v23_v1   ;;  %5060 = vmatprep.subr.bf16.mxu0 %v5059_v15  ;;  %v5415_v53 = vld [vmem:[%s6005_s2 + $0x20] sm:$0xff]  ;;  %v5075_v54 = vpack.c.bf16 %v5410_v52, %v5405_v51  ;;  %v4495_v0 = vld [vmem:[%s6007_s4 + $0x10] ss:$0 sm:$0xff]  ;;  %v4496_v4 = vld [vmem:[%s6007_s4 + $0x11] ss:$0 sm:$0xff]  ;;  %vm5301_vm8 = vmmov 0  }
   0x9   :  { %v5385_v23 = vrot.slane %v182_v16, %v5376_v20  ;;  %v5079_v56 = vpack.c.bf16 %v5422_v55, %v5415_v53  ;;  %v4497_v9 = vld [vmem:[%s6007_s4] ss:$0 sm:$0xff]  ;;  %vm307_vm9 = vcmask 64512   ;;  %v5472_v21 = vsub.s32 0, %v5373_v14  ;;  %s5305_s9 = smov 64   ;;  %s5306_s10 = smov 80  }
   0xa   :  { %5062 = vmatpush3.bf16.msra.mxu0 %v5059_v15  ;;  %5076 = vmatprep.subr.bf16.mxu1 %v5075_v54  ;;  %s5307_s11 = smov 112   ;;  %s5308_s12 = smov 56   ;;  %vm2161_vm10 = vcmask 523264   ;;  %vm4377_vm11 = vcmask 58368   ;;  %vm4399_vm12 = vcmask 1041409   ;;  %vm4475_vm13 = vcmask 8192  }
   0xb   :  { %5064 = vmatprep.subr.bf16.mxu0 %v5063_v19  ;;  %v198_v24 = vrot.slane %v5385_v23, %v5376_v20  ;;  %5078 = vmatpush3.bf16.msra.mxu1 %v5075_v54  ;;  %v191_v17 = vcombine.high %v5385_v23, %v5385_v23  ;;  %s5309_s13 = smov 32   ;;  %s5310_s14 = smov 48  }
   0xc   :  { %5080 = vmatprep.subr.bf16.mxu1 %v5079_v56  ;;  %s5311_s15 = smov 72   ;;  %s5312_s16 = smov 104  }
   0xd   :  { %v205_v18 = vrot.slane %v191_v17, %v5376_v20  ;;  %s5313_s17 = smov 40  }
   0xe   :  { %5066 = vmatpush3.bf16.msra.mxu0 %v5063_v19 }
   0xf   :  { %5068 = vmatprep.subr.bf16.mxu0 %v5067_v25  ;;  %5082 = vmatpush3.bf16.msra.mxu1 %v5079_v56  ;;  %v209_v19 = vmul.f32 -1e+09, %v205_v18 }
  0x10   :  { %4784 = vmatprep.subr.mxu1 %v5300_v29 }
  0x11   :  { %v5475_v22 = vrot.slane %v209_v19, %v5472_v21 }
  0x12   :  { %5070 = vmatpush3.bf16.msra.mxu0 %v5067_v25 }
  0x13   :  { %5072 = vmatprep.subr.bf16.mxu0 %v5071_v28 }
  0x16   :  { %5074 = vmatpush3.bf16.msra.mxu0 %v5071_v28 }
  0x17   :  { %4779 = vmatprep.subr.mxu0 %v5300_v29 }
  0x81   :  { %v27_v30 = vpop.permute.xlu0 %26  ;;  %v30_v31 = vpop.permute.xlu1 %29 }
  0x82   :  { %vm32_vm0 = vcmp.eq.s32.totalorder %v22_v32, %v30_v31  ;;  %vm31_vm3 = vcmp.eq.s32.totalorder %v22_v32, %v27_v30 }
  0x86   :  { %v38_v33 = vpop.permute.xlu1 %37 }
  0x87   :  { %v35_v34 = vpop.permute.xlu0 %34  ;;  %vm40_vm1 = vcmp.eq.s32.totalorder %v22_v32, %v38_v33 }
  0x88   :  { %vm39_vm2 = vcmp.eq.s32.totalorder %v22_v32, %v35_v34  ;;  %vm42_vm4 = vmor %vm32_vm0, %vm40_vm1 }
  0x89   :  { %vm41_vm6 = vmor %vm31_vm3, %vm39_vm2  ;;  %v4492_v35 = vsel %vm42_vm4, 1.0, %v5300_v29 }
  0x8a   :  { %v4491_v36 = vsel %vm41_vm6, 1.0, %v5300_v29 }
  0x8b   :  { %4765 = vmatprep.mubr.msk.f32.mxu0 %vm57_vm5, %v4491_v36 }
  0x8c   :  { %4766 = vmatmul.mubr.msk.f32.vlgmr.msra.gmra.mrb[0].mxu0 %vm57_vm5, %v4492_v35 }
  0x8d   :  { %4781 = vmatprep.mubr.msk.f32.mxu0 %vm5301_vm8, %v5300_v29 }
 0x15f   :  { %v4767_v37 = vpop.f32.mrb[0].mxu0 }
 0x160   :  { %v130_v38 = vpop.f32.mrb[1].mxu0  ;;  %v145_v39 = vsel %vm141_vm7, %v4767_v37, 0.0 }
 0x161   :  { %146 = vadd.xlane.f32.xlu0 %v145_v39  ;;  %v142_v40 = vsel %vm141_vm7, %v130_v38, 0.0 }
 0x162   :  { %143 = vadd.xlane.f32.xlu1 %v142_v40 }
 0x1ee   :  { %v147_v41 = vpop.xlane.xlu0 %146 }
 0x1ef   :  { %v150_v42 = vmul.f32 0.03125, %v147_v41  ;;  %v144_v43 = vpop.xlane.xlu1 %143 }
 0x1f0   :  { %v149_v44 = vmul.f32 0.03125, %v144_v43 }
 0x1f1   :  { %v152_v45 = vsub.f32 %v4767_v37, %v150_v42 }
 0x1f2   :  { %v151_v46 = vsub.f32 %v130_v38, %v149_v44  ;;  %v208_v38 = vmul.f32 -1e+09, %v198_v24 }
 0x1f3   :  { %v154_v47 = vmul.f32 %v152_v45, %v152_v45 }
 0x1f4   :  { %v153_v48 = vmul.f32 %v151_v46, %v151_v46  ;;  %v5490_v39 = vrot.slane %v208_v38, %v5472_v21 }
 0x1f5   :  { %v158_v49 = vsel %vm141_vm7, %v154_v47, 0.0 }
 0x1f6   :  { %159 = vadd.xlane.f32.xlu1 %v158_v49  ;;  %v155_v50 = vsel %vm141_vm7, %v153_v48, 0.0 }
 0x1f7   :  { %156 = vadd.xlane.f32.xlu0 %v155_v50 }
 0x283   :  { %v160_v57 = vpop.xlane.xlu1 %159 }
 0x284   :  { %v162_v58 = vmul.f32 0.03125, %v160_v57  ;;  %v157_v59 = vpop.xlane.xlu0 %156 }
 0x285   :  { %v161_v60 = vmul.f32 0.03125, %v157_v59 }
 0x286   :  { %v164_v61 = vadd.f32 1e-12, %v162_v58 }
 0x287   :  { %v163_v62 = vadd.f32 1e-12, %v161_v60 }
 0x288   :  { %5176 = vrsqrt.f32 %v164_v61 }
 0x289   :  { %5178 = vrsqrt.f32 %v163_v62 }
 0x292   :  { %v5177_v63 = vpop.eup %5176 }
 0x293   :  { %v5179_v1 = vpop.eup %5178  ;;  %v168_v2 = vmul.f32 %v5177_v63, %v152_v45 }
 0x294   :  { %v167_v3 = vmul.f32 %v5179_v1, %v151_v46 }
 0x295   :  { %v174_v5 = vmul.f32 %v4495_v0, %v168_v2 }
 0x296   :  { %v173_v6 = vmul.f32 %v4495_v0, %v167_v3 }
 0x297   :  { %v5435_v8 = vadd.f32 %v4496_v4, %v174_v5 }
 0x298   :  { %v5433_v7 = vadd.f32 %v4496_v4, %v173_v6 }
 0x29a   :  { %4776 = vmatprep.mubr.msk.f32.mxu1 %vm141_vm7, %v5433_v7 }
 0x29b   :  { %4777 = vmatmul.mubr.msk.f32.vlgmr.msra.gmra.mrb[0].mxu1 %vm141_vm7, %v5435_v8 }
 0x29c   :  { %4786 = vmatprep.mubr.msk.f32.mxu1 %vm5301_vm8, %v5300_v29 }
 0x36e   :  { %v4778_v10 = vpop.f32.mrb[0].mxu1 }
 0x36f   :  { %v5448_v11 = vadd.f32 %v4778_v10, %v4497_v9  ;;  %v295_v12 = vpop.f32.mrb[1].mxu1 }
 0x370   :  { %v5450_v13 = vadd.f32 %v4497_v9, %v295_v12 }
 0x371   :  { %383 = vrot.lane.b32.xlu0 %v5448_v11, %s5302_s6 }
 0x372   :  { %305 = vrot.lane.b32.xlu1 %v5450_v13, %s5302_s6 }
 0x3e3   :  { %v384_v15 = vpop.permute.xlu0 %383 }
 0x3e4   :  { %4785 = vmatpush3.xpose.msk.msra.mxu1 %vm307_vm9, %v384_v15  ;;  %v306_v16 = vpop.permute.xlu1 %305 }
 0x3e5   :  { %4780 = vmatpush3.xpose.msk.msra.mxu0 %vm307_vm9, %v306_v16  ;;  %4789 = vmatprep.subr.mxu1 %v5300_v29 }
 0x3e6   :  { %4794 = vmatprep.subr.mxu0 %v5300_v29 }
 0x3e7   :  { %4787 = vmatmul.mubr.msk.f32.vlgmr.msra.gmra.mrb[2].mxu1 %vm307_vm9, %v5448_v11 }
 0x3e8   :  { %4782 = vmatmul.mubr.msk.f32.vlgmr.msra.gmra.mrb[2].mxu0 %vm307_vm9, %v5450_v13  ;;  %4791 = vmatprep.mubr.msk.f32.mxu1 %vm5301_vm8, %v5300_v29 }
 0x3e9   :  { %4796 = vmatprep.mubr.msk.f32.mxu0 %vm5301_vm8, %v5300_v29 }
 0x4ba   :  { %v455_v25 = vpop.f32.mrb[2].mxu1 }
 0x4bb   :  { %v460_v26 = vmul.f32 0.35355338, %v455_v25  ;;  %v378_v27 = vpop.f32.mrb[2].mxu0  ;;  %v4788_v28 = vpop.f32.mrb[3].mxu1 }
 0x4bc   :  { %v4783_v30 = vpop.f32.mrb[3].mxu0  ;;  %v459_v40 = vmul.f32 0.35355338, %v378_v27 }
 0x4bd   :  { %v474_v31 = vadd.f32 %v5475_v22, %v460_v26 }
 0x4be   :  { %v473_v41 = vadd.f32 %v5490_v39, %v459_v40 }
 0x4bf   :  { %v478_v32 = vsel %vm307_vm9, %v474_v31, -inf }
 0x4c0   :  { %479 = vmax.xlane.f32.xlu1 %v478_v32  ;;  %v475_v42 = vsel %vm307_vm9, %v473_v41, -inf }
 0x4d1   :  { %729 = vrot.lane.b32.xlu1 %v5448_v11, %s5303_s7 }
 0x4d5   :  { %727 = vrot.lane.b32.xlu1 %v5448_v11, %s5304_s8 }
 0x54d   :  { %v480_v33 = vpop.xlane.xlu1 %479 }
 0x54e   :  { %v482_v34 = vsub.f32 %v474_v31, %v480_v33 }
 0x550   :  { %v485_v35 = vmul.f32 1.442695, %v482_v34 }
 0x551   :  { %v730_v23 = vpop.permute.xlu1 %729 }
 0x552   :  { %5180 = vpow2.f32 %v485_v35 }
 0x555   :  { %v728_v45 = vpop.permute.xlu1 %727 }
 0x55c   :  { %v5181_v36 = vpop.eup %5180 }
 0x55d   :  { %v490_v37 = vsel %vm307_vm9, %v5181_v36, 0.0 }
 0x55e   :  { %491 = vadd.xlane.f32.xlu0 %v490_v37 }
 0x574   :  { %573 = vrot.lane.b32.xlu0 %v5448_v11, %s5305_s9 }
 0x593   :  { %476 = vmax.xlane.f32.xlu0 %v475_v42 }
 0x5a9   :  { %497 = vrot.lane.b32.xlu0 %v5450_v13, %s5305_s9 }
 0x5ad   :  { %649 = vrot.lane.b32.xlu0 %v5450_v13, %s5304_s8 }
 0x5eb   :  { %v492_v43 = vpop.xlane.xlu0 %491 }
 0x5ec   :  { %5182 = vrcp.f32 %v492_v43 }
 0x5ef   :  { %v574_v44 = vpop.permute.xlu0 %573 }
 0x5f0   :  { %4795 = vmatpush3.msra.mxu0 %v574_v44 }
 0x5f1   :  { %4804 = vmatprep.subr.mxu0 %v5300_v29 }
 0x5f6   :  { %v5183_v20 = vpop.eup %5182 }
 0x5f7   :  { %v496_v24 = vmul.f32 %v5183_v20, %v5181_v36 }
 0x5f9   :  { %4797 = vmatmul.mubr.msk.f32.vlgmr.msra.gmra.mrb[4].mxu0 %vm307_vm9, %v496_v24 }
 0x5fa   :  { %4805 = vmatpush3.xpose.msk.msra.mxu0 %vm307_vm9, %v730_v23  ;;  %4806 = vmatprep.mubr.msk.f32.mxu0 %vm5301_vm8, %v5300_v29 }
 0x5fb   :  { %4814 = vmatprep.subr.mxu0 %v5300_v29 }
 0x5fd   :  { %4807 = vmatmul.mubr.msk.f32.vlgmr.msra.gmra.mrb[6].mxu0 %vm307_vm9, %v728_v45 }
 0x5fe   :  { %4816 = vmatprep.mubr.msk.f32.mxu0 %vm5301_vm8, %v5300_v29 }
 0x620   :  { %v477_v46 = vpop.xlane.xlu0 %476 }
 0x621   :  { %v481_v47 = vsub.f32 %v473_v41, %v477_v46 }
 0x623   :  { %v483_v48 = vmul.f32 1.442695, %v481_v47 }
 0x624   :  { %v498_v49 = vpop.permute.xlu0 %497 }
 0x625   :  { %5184 = vpow2.f32 %v483_v48  ;;  %4790 = vmatpush3.msra.mxu1 %v498_v49 }
 0x626   :  { %4799 = vmatprep.subr.mxu1 %v5300_v29 }
 0x628   :  { %v650_v62 = vpop.permute.xlu0 %649 }
 0x62f   :  { %v5185_v50 = vpop.eup %5184 }
 0x630   :  { %v487_v54 = vsel %vm307_vm9, %v5185_v50, 0.0 }
 0x631   :  { %488 = vadd.xlane.f32.xlu1 %v487_v54 }
 0x642   :  { %651 = vrot.lane.b32.xlu1 %v5450_v13, %s5303_s7 }
 0x6be   :  { %v489_v56 = vpop.xlane.xlu1 %488 }
 0x6bf   :  { %5186 = vrcp.f32 %v489_v56 }
 0x6c2   :  { %v652_v59 = vpop.permute.xlu1 %651 }
 0x6c9   :  { %v5187_v57 = vpop.eup %5186 }
 0x6ca   :  { %v495_v58 = vmul.f32 %v5187_v57, %v5185_v50 }
 0x6cc   :  { %4792 = vmatmul.mubr.msk.f32.vlgmr.msra.gmra.mrb[4].mxu1 %vm307_vm9, %v495_v58  ;;  %v5512_v60 = vpop.f32.mrb[4].mxu0 }
 0x6cd   :  { %4800 = vmatpush3.xpose.msk.msra.mxu1 %vm307_vm9, %v652_v59  ;;  %v4798_v61 = vpop.f32.mrb[5].mxu0  ;;  %4801 = vmatprep.mubr.msk.f32.mxu1 %vm5301_vm8, %v5300_v29 }
 0x6ce   :  { %4809 = vmatprep.subr.mxu1 %v5300_v29 }
 0x6d0   :  { %4802 = vmatmul.mubr.msk.f32.vlgmr.msra.gmra.mrb[6].mxu1 %vm307_vm9, %v650_v62  ;;  %v801_v63 = vpop.f32.mrb[6].mxu0 }
 0x6d1   :  { %v806_v0 = vmul.f32 0.35355338, %v801_v63  ;;  %v4808_v1 = vpop.f32.mrb[7].mxu0  ;;  %4811 = vmatprep.mubr.msk.f32.mxu1 %vm5301_vm8, %v5300_v29 }
 0x6d3   :  { %v808_v2 = vadd.f32 %v806_v0, %v5475_v22 }
 0x6d5   :  { %v812_v3 = vsel %vm307_vm9, %v808_v2, -inf }
 0x6d6   :  { %813 = vmax.xlane.f32.xlu1 %v812_v3 }
 0x6e7   :  { %1155 = vrot.lane.b32.xlu1 %v5450_v13, %s5306_s10 }
 0x6eb   :  { %1153 = vrot.lane.b32.xlu1 %v5450_v13, %s5307_s11 }
 0x6ef   :  { %1231 = vrot.lane.b32.xlu1 %v5448_v11, %s5307_s11 }
 0x763   :  { %v814_v4 = vpop.xlane.xlu1 %813 }
 0x764   :  { %v816_v5 = vsub.f32 %v808_v2, %v814_v4 }
 0x766   :  { %v819_v6 = vmul.f32 1.442695, %v816_v5 }
 0x767   :  { %v1156_v27 = vpop.permute.xlu1 %1155 }
 0x768   :  { %5188 = vpow2.f32 %v819_v6 }
 0x772   :  { %v5189_v9 = vpop.eup %5188 }
 0x773   :  { %v824_v10 = vsel %vm307_vm9, %v5189_v9, 0.0 }
 0x774   :  { %825 = vadd.xlane.f32.xlu0 %v824_v10 }
 0x78a   :  { %907 = vrot.lane.b32.xlu0 %v5448_v11, %s5308_s12 }
 0x78e   :  { %1233 = vrot.lane.b32.xlu0 %v5448_v11, %s5306_s10 }
 0x79f   :  { %v5534_v12 = vpop.f32.mrb[4].mxu1 }
 0x7a0   :  { %v4793_v15 = vpop.f32.mrb[5].mxu1 }
 0x7a3   :  { %v723_v16 = vpop.f32.mrb[6].mxu1 }
 0x7a4   :  { %v805_v17 = vmul.f32 0.35355338, %v723_v16  ;;  %v4803_v18 = vpop.f32.mrb[7].mxu1 }
 0x7a6   :  { %v807_v19 = vadd.f32 %v805_v17, %v5490_v39 }
 0x7a8   :  { %v809_v25 = vsel %vm307_vm9, %v807_v19, -inf }
 0x7ad   :  { %810 = vmax.xlane.f32.xlu0 %v809_v25 }
 0x7c3   :  { %831 = vrot.lane.b32.xlu0 %v5450_v13, %s5308_s12 }
 0x7c7   :  { %1069 = vrot.lane.b32.xlu0 %v5405_v51, %s5309_s13 }
 0x7cb   :  { %1335 = vrot.lane.b32.xlu0 %v5450_v13, %s5310_s14 }
 0x7cf   :  { %1411 = vrot.lane.b32.xlu0 %v5448_v11, %s5310_s14 }
 0x7d3   :  { %1488 = vrot.lane.b32.xlu0 %v5415_v53, %s5309_s13  ;;  %v1154_v53 = vpop.permute.xlu1 %1153 }
 0x7d7   :  { %1576 = vrot.lane.b32.xlu0 %v5450_v13, %s5311_s15  ;;  %v1232_v32 = vpop.permute.xlu1 %1231 }
 0x7db   :  { %1574 = vrot.lane.b32.xlu0 %v5450_v13, %s5312_s16 }
 0x801   :  { %v826_v26 = vpop.xlane.xlu0 %825 }
 0x802   :  { %5190 = vrcp.f32 %v826_v26 }
 0x805   :  { %v908_v51 = vpop.permute.xlu0 %907 }
 0x806   :  { %4815 = vmatpush3.msra.mxu0 %v908_v51 }
 0x807   :  { %4829 = vmatprep.subr.mxu0 %v5300_v29 }
 0x809   :  { %v1234_v31 = vpop.permute.xlu0 %1233 }
 0x80c   :  { %v5191_v28 = vpop.eup %5190 }
 0x80d   :  { %v830_v30 = vmul.f32 %v5191_v28, %v5189_v9 }
 0x80f   :  { %4817 = vmatmul.mubr.msk.f32.vlgmr.msra.gmra.mrb[8].mxu0 %vm307_vm9, %v830_v30 }
 0x810   :  { %4830 = vmatpush3.xpose.msk.msra.mxu0 %vm307_vm9, %v1156_v27  ;;  %4831 = vmatprep.mubr.msk.f32.mxu0 %vm5301_vm8, %v5300_v29 }
 0x811   :  { %4834 = vmatprep.subr.mxu0 %v5300_v29 }
 0x813   :  { %4832 = vmatmul.mubr.msk.f32.vlgmr.msra.gmra.mrb[10].mxu0 %vm307_vm9, %v1154_v53 }
 0x814   :  { %4835 = vmatpush3.xpose.msk.msra.mxu0 %vm307_vm9, %v1234_v31  ;;  %4836 = vmatprep.mubr.msk.f32.mxu0 %vm5301_vm8, %v5300_v29 }
 0x815   :  { %4844 = vmatprep.subr.mxu0 %v5300_v29 }
 0x817   :  { %4837 = vmatmul.mubr.msk.f32.vlgmr.msra.gmra.mrb[12].mxu0 %vm307_vm9, %v1232_v32 }
 0x818   :  { %4846 = vmatprep.mubr.msk.f32.mxu0 %vm5301_vm8, %v5300_v29 }
 0x83a   :  { %v811_v33 = vpop.xlane.xlu0 %810 }
 0x83b   :  { %v815_v34 = vsub.f32 %v807_v19, %v811_v33 }
 0x83d   :  { %v817_v35 = vmul.f32 1.442695, %v815_v34 }
 0x83e   :  { %v832_v36 = vpop.permute.xlu0 %831 }
 0x83f   :  { %5192 = vpow2.f32 %v817_v35  ;;  %4810 = vmatpush3.msra.mxu1 %v832_v36 }
 0x842   :  { %v1070_v37 = vpop.permute.xlu0 %1069 }
 0x846   :  { %v5566_v38 = vpop.permute.xlu0 %1335 }
 0x849   :  { %v5193_v40 = vpop.eup %5192 }
 0x84a   :  { %v1412_v41 = vpop.permute.xlu0 %1411  ;;  %v821_v42 = vsel %vm307_vm9, %v5193_v40, 0.0 }
 0x84b   :  { %822 = vadd.xlane.f32.xlu1 %v821_v42  ;;  %4845 = vmatpush3.msra.mxu0 %v1412_v41 }
 0x84c   :  { %4854 = vmatprep.subr.mxu0 %v5300_v29 }
 0x84e   :  { %v1489_v17 = vpop.permute.xlu0 %1488 }
 0x852   :  { %v1577_v18 = vpop.permute.xlu0 %1576 }
 0x8d8   :  { %v823_v43 = vpop.xlane.xlu1 %822 }
 0x8d9   :  { %5194 = vrcp.f32 %v823_v43 }
 0x8e2   :  { %v979_v44 = vpop.f32.mrb[8].mxu0 }
 0x8e3   :  { %v5195_v20 = vpop.eup %5194  ;;  %v4818_v23 = vpop.f32.mrb[9].mxu0 }
 0x8e4   :  { %v829_v24 = vmul.f32 %v5195_v20, %v5193_v40 }
 0x8e6   :  { %4812 = vmatmul.mubr.msk.f32.vlgmr.msra.gmra.mrb[8].mxu1 %vm307_vm9, %v829_v24  ;;  %v1227_v45 = vpop.f32.mrb[10].mxu0 }
 0x8e7   :  { %v1309_v46 = vmul.f32 0.35355338, %v1227_v45  ;;  %v4833_v47 = vpop.f32.mrb[11].mxu0 }
 0x8e9   :  { %v1311_v48 = vadd.f32 %v1309_v46, %v5490_v39 }
 0x8ea   :  { %v1305_v49 = vpop.f32.mrb[12].mxu0 }
 0x8eb   :  { %v1310_v50 = vmul.f32 0.35355338, %v1305_v49  ;;  %v4838_v54 = vpop.f32.mrb[13].mxu0  ;;  %v1313_v56 = vsel %vm307_vm9, %v1311_v48, -inf }
 0x8ec   :  { %1314 = vmax.xlane.f32.xlu1 %v1313_v56 }
 0x8ed   :  { %v1312_v57 = vadd.f32 %v1310_v50, %v5475_v22 }
 0x8ef   :  { %v1316_v58 = vsel %vm307_vm9, %v1312_v57, -inf }
 0x8f0   :  { %1317 = vmax.xlane.f32.xlu1 %v1316_v58 }
 0x979   :  { %v1315_v59 = vpop.xlane.xlu1 %1314 }
 0x97a   :  { %v1319_v61 = vsub.f32 %v1311_v48, %v1315_v59 }
 0x97c   :  { %v1321_v62 = vmul.f32 1.442695, %v1319_v61 }
 0x97d   :  { %v1318_v63 = vpop.xlane.xlu1 %1317 }
 0x97e   :  { %5196 = vpow2.f32 %v1321_v62  ;;  %v1320_v0 = vsub.f32 %v1312_v57, %v1318_v63 }
 0x980   :  { %v1323_v1 = vmul.f32 1.442695, %v1320_v0 }
 0x982   :  { %5198 = vpow2.f32 %v1323_v1 }
 0x988   :  { %v5197_v2 = vpop.eup %5196 }
 0x989   :  { %v1325_v3 = vsel %vm307_vm9, %v5197_v2, 0.0 }
 0x98a   :  { %1326 = vadd.xlane.f32.xlu1 %v1325_v3 }
 0x98c   :  { %v5199_v4 = vpop.eup %5198 }
 0x98d   :  { %v1328_v5 = vsel %vm307_vm9, %v5199_v4, 0.0 }
 0x98e   :  { %1329 = vadd.xlane.f32.xlu1 %v1328_v5 }
 0x99f   :  { %984 = vrot.lane.b32.xlu1 %v5410_v52, %s5309_s13 }
 0x9a3   :  { %1654 = vrot.lane.b32.xlu1 %v5448_v11, %s5311_s15 }
 0x9a7   :  { %1652 = vrot.lane.b32.xlu1 %v5448_v11, %s5312_s16 }
 0x9b9   :  { %v903_v6 = vpop.f32.mrb[8].mxu1 }
 0x9ba   :  { %v4813_v9 = vpop.f32.mrb[9].mxu1  ;;  %4821 = vmatprep.mubr.msk.f32.mxu1 %vm307_vm9, %v903_v6 }
 0xa17   :  { %v1327_v10 = vpop.xlane.xlu1 %1326 }
 0xa1b   :  { %v1330_v15 = vpop.xlane.xlu1 %1329 }
 0xa1c   :  { %5200 = vrcp.f32 %v1330_v15 }
 0xa1d   :  { %5202 = vrcp.f32 %v1327_v10 }
 0xa1f   :  { %v985_v16 = vpop.permute.xlu1 %984 }
 0xa20   :  { %4819 = vmatprep.subr.mxu1 %v985_v16 }
 0xa21   :  { %4820 = vmatpush3.msra.mxu1 %v985_v16 }
 0xa22   :  { %4822 = vmatmul.mubr.msk.f32.vlgmr.msra.gmra.mrb[10].mxu1 %vm307_vm9, %v979_v44  ;;  %4824 = vmatprep.subr.mxu1 %v1070_v37 }
 0xa23   :  { %4826 = vmatprep.mubr.msk.f32.mxu1 %vm307_vm9, %v5534_v12  ;;  %4825 = vmatpush3.msra.mxu1 %v1070_v37  ;;  %v1575_v12 = vpop.permute.xlu0 %1574  ;;  %v1655_v27 = vpop.permute.xlu1 %1654 }
 0xa24   :  { %4839 = vmatprep.subr.mxu1 %v5300_v29 }
 0xa26   :  { %v5201_v52 = vpop.eup %5200 }
 0xa27   :  { %v1334_v19 = vmul.f32 %v5201_v52, %v5199_v4  ;;  %v5203_v25 = vpop.eup %5202  ;;  %v1653_v35 = vpop.permute.xlu1 %1652 }
 0xa28   :  { %v1333_v26 = vmul.f32 %v5203_v25, %v5197_v2 }
 0xa29   :  { %4847 = vmatmul.mubr.msk.f32.vlgmr.msra.gmra.mrb[14].mxu0 %vm307_vm9, %v1334_v19 }
 0xa2a   :  { %4855 = vmatpush3.xpose.msk.msra.mxu0 %vm307_vm9, %v1577_v18  ;;  %4827 = vmatmul.mubr.msk.f32.vlgmr.msra.gmra.mrb[10].mxu1 %vm307_vm9, %v5512_v60 }
 0xa2b   :  { %4840 = vmatpush3.msra.mxu1 %v5566_v38  ;;  %4856 = vmatprep.mubr.msk.f32.mxu0 %vm5301_vm8, %v5300_v29 }
 0xa2c   :  { %4841 = vmatprep.mubr.msk.f32.mxu1 %vm5301_vm8, %v5300_v29  ;;  %4849 = vmatprep.subr.mxu1 %v1489_v17 }
 0xa2d   :  { %4857 = vmatmul.mubr.msk.f32.vlgmr.msra.gmra.mrb[16].mxu0 %vm307_vm9, %v1575_v12  ;;  %4864 = vmatprep.subr.mxu0 %v5300_v29 }
 0xa2e   :  { %4842 = vmatmul.mubr.msk.f32.vlgmr.msra.gmra.mrb[12].mxu1 %vm307_vm9, %v1333_v26  ;;  %4866 = vmatprep.mubr.msk.f32.mxu0 %vm5301_vm8, %v5300_v29 }
 0xa2f   :  { %4850 = vmatpush3.msra.mxu1 %v1489_v17 }
 0xa30   :  { %4859 = vmatprep.subr.mxu1 %v5300_v29 }
 0xafc   :  { %v1483_v60 = vpop.f32.mrb[14].mxu0 }
 0xafd   :  { %v4848_v51 = vpop.f32.mrb[15].mxu0 }
 0xb00   :  { %v1648_v28 = vpop.f32.mrb[16].mxu0 }
 0xb01   :  { %v1730_v30 = vmul.f32 0.35355338, %v1648_v28  ;;  %v1407_v53 = vpop.f32.mrb[12].mxu1  ;;  %v4858_v31 = vpop.f32.mrb[17].mxu0  ;;  %v217_v28 = vld [vmem:[%s6005_s2 + $0x38] sm:$0xff] }
 0xb02   :  { %v4843_v32 = vpop.f32.mrb[13].mxu1  ;;  %4851 = vmatprep.mubr.msk.f32.mxu1 %vm307_vm9, %v1407_v53 }
 0xb03   :  { %4852 = vmatmul.mubr.msk.f32.vlgmr.msra.gmra.mrb[10].mxu1 %vm307_vm9, %v1483_v60  ;;  %v1732_v33 = vadd.f32 %v1730_v30, %v5490_v39  ;;  %v213_v60 = vld [vmem:[%s6005_s2 + $0x18] sm:$0xff] }
 0xb04   :  { %4860 = vmatpush3.xpose.msk.msra.mxu1 %vm307_vm9, %v1655_v27  ;;  %4861 = vmatprep.mubr.msk.f32.mxu1 %vm5301_vm8, %v5300_v29  ;;  %v215_v27 = vld [vmem:[%s6005_s2 + $0x28] sm:$0xff] }
 0xb05   :  { %v1734_v34 = vsel %vm307_vm9, %v1732_v33, -inf  ;;  %4869 = vmatprep.subr.mxu1 %v5300_v29  ;;  %v5087_v30 = vpack.c.bf16 %v217_v28, %v215_v27 }
 0xb06   :  { %1735 = vmax.xlane.f32.xlu0 %v1734_v34 }
 0xb07   :  { %4862 = vmatmul.mubr.msk.f32.vlgmr.msra.gmra.mrb[14].mxu1 %vm307_vm9, %v1653_v35 }
 0xb08   :  { %4871 = vmatprep.mubr.msk.f32.mxu1 %vm5301_vm8, %v5300_v29 }
 0xb93   :  { %v1736_v36 = vpop.xlane.xlu0 %1735 }
 0xb94   :  { %v1740_v37 = vsub.f32 %v1732_v33, %v1736_v36 }
 0xb96   :  { %v1742_v38 = vmul.f32 1.442695, %v1740_v37  ;;  %v4533_v37 = vld [vmem:[%s6007_s4 + $0x4] ss:$0 sm:$0xff] }
 0xb98   :  { %5204 = vpow2.f32 %v1742_v38 }
 0xba2   :  { %v5205_v40 = vpop.eup %5204 }
 0xba3   :  { %v1746_v41 = vsel %vm307_vm9, %v5205_v40, 0.0 }
 0xba4   :  { %1747 = vadd.xlane.f32.xlu0 %v1746_v41 }
 0xbda   :  { %v1726_v42 = vpop.f32.mrb[14].mxu1 }
 0xbdb   :  { %v1731_v43 = vmul.f32 0.35355338, %v1726_v42  ;;  %v4863_v44 = vpop.f32.mrb[15].mxu1  ;;  %v4534_v42 = vld [vmem:[%s6007_s4 + $0x5] ss:$0 sm:$0xff] }
 0xbdd   :  { %v1733_v20 = vadd.f32 %v1731_v43, %v5475_v22 }
 0xbdf   :  { %v1737_v23 = vsel %vm307_vm9, %v1733_v20, -inf }
 0xbe0   :  { %1738 = vmax.xlane.f32.xlu1 %v1737_v23 }
 0xbf1   :  { %1756 = vrot.lane.b32.xlu1 %v5450_v13, %s5313_s17 }
 0xbf5   :  { %1909 = vrot.lane.b32.xlu1 %v5422_v55, %s5309_s13 }
 0xc31   :  { %v1748_v24 = vpop.xlane.xlu0 %1747 }
 0xc32   :  { %5206 = vrcp.f32 %v1748_v24  ;;  %v2148_v24 = vld [vmem:[%s6006_s3 + $0x50] sm:$0xff] }
 0xc3c   :  { %v5207_v46 = vpop.eup %5206 }
 0xc3d   :  { %v1754_v49 = vmul.f32 %v5207_v46, %v5205_v40 }
 0xc6d   :  { %v1739_v45 = vpop.xlane.xlu1 %1738 }
 0xc6e   :  { %v1741_v47 = vsub.f32 %v1733_v20, %v1739_v45  ;;  %v2149_v45 = vld [vmem:[%s6006_s3 + $0x58] sm:$0xff] }
 0xc6f   :  { %v5091_v46 = vpack.c.bf16 %v2149_v45, %v2148_v24 }
 0xc70   :  { %v1744_v48 = vmul.f32 1.442695, %v1741_v47  ;;  %v2150_v47 = vld [vmem:[%s6006_s3 + $0x60] sm:$0xff] }
 0xc71   :  { %v1757_v50 = vpop.permute.xlu1 %1756 }
 0xc72   :  { %5208 = vpow2.f32 %v1744_v48  ;;  %4865 = vmatpush3.msra.mxu0 %v1757_v50  ;;  %v2151_v48 = vld [vmem:[%s6006_s3 + $0x68] sm:$0xff]  ;;  %v2152_v50 = vld [vmem:[%s6006_s3 + $0x70] sm:$0xff] }
 0xc73   :  { %4867 = vmatmul.mubr.msk.f32.vlgmr.msra.gmra.mrb[18].mxu0 %vm307_vm9, %v1754_v49  ;;  %v5095_v49 = vpack.c.bf16 %v2151_v48, %v2150_v47 }
 0xc75   :  { %v1910_v13 = vpop.permute.xlu1 %1909 }
 0xc7c   :  { %v5209_v54 = vpop.eup %5208 }
 0xc7d   :  { %v1749_v56 = vsel %vm307_vm9, %v5209_v54, 0.0 }
 0xc7e   :  { %1750 = vadd.xlane.f32.xlu0 %v1749_v56 }
 0xc94   :  { %1832 = vrot.lane.b32.xlu0 %v5448_v11, %s5313_s17  ;;  %v4532_v11 = vld [vmem:[%s6007_s4 + $0x1] ss:$0 sm:$0xff] }
 0xd0b   :  { %v1751_v55 = vpop.xlane.xlu0 %1750 }
 0xd0c   :  { %5210 = vrcp.f32 %v1751_v55  ;;  %v2154_v55 = vld [vmem:[%s6006_s3 + $0x80] sm:$0xff] }
 0xd0f   :  { %v1833_v57 = vpop.permute.xlu0 %1832 }
 0xd10   :  { %4870 = vmatpush3.msra.mxu1 %v1833_v57 }
 0xd11   :  { %4874 = vmatprep.subr.mxu1 %v1910_v13 }
 0xd16   :  { %v5211_v58 = vpop.eup %5210 }
 0xd17   :  { %v1755_v59 = vmul.f32 %v5211_v58, %v5209_v54  ;;  %v2153_v54 = vld [vmem:[%s6006_s3 + $0x78] sm:$0xff]  ;;  %v4535_v58 = vld [vmem:[%s6007_s4 + $0x2] ss:$0 sm:$0xff] }
 0xd18   :  { %v5099_v56 = vpack.c.bf16 %v2153_v54, %v2152_v50 }
 0xd19   :  { %4872 = vmatmul.mubr.msk.f32.vlgmr.msra.gmra.mrb[16].mxu1 %vm307_vm9, %v1755_v59 }
 0xd1a   :  { %4875 = vmatpush3.msra.mxu1 %v1910_v13  ;;  %v2155_v13 = vld [vmem:[%s6006_s3 + $0x88] sm:$0xff] }
 0xd1b   :  { %5092 = vmatprep.subr.bf16.mxu1 %v5091_v46  ;;  %v5103_v57 = vpack.c.bf16 %v2155_v13, %v2154_v55 }
 0xd46   :  { %v1828_v61 = vpop.f32.mrb[18].mxu0 }
 0xd47   :  { %v4868_v62 = vpop.f32.mrb[19].mxu0  ;;  %4876 = vmatprep.mubr.msk.f32.mxu1 %vm307_vm9, %v1828_v61 }
 0xdec   :  { %v1904_v63 = vpop.f32.mrb[16].mxu1 }
 0xded   :  { %v4873_v0 = vpop.f32.mrb[17].mxu1  ;;  %4877 = vmatmul.mubr.msk.f32.vlgmr.msra.gmra.mrb[10].mxu1 %vm307_vm9, %v1904_v63 }
 0xdee   :  { %5094 = vmatpush3.bf16.msra.mxu1 %v5091_v46 }
 0xdef   :  { %5096 = vmatprep.subr.bf16.mxu1 %v5095_v49 }
 0xdf2   :  { %5098 = vmatpush3.bf16.msra.mxu1 %v5095_v49 }
 0xdf3   :  { %5100 = vmatprep.subr.bf16.mxu1 %v5099_v56 }
 0xdf6   :  { %5102 = vmatpush3.bf16.msra.mxu1 %v5099_v56  ;;  %v4541_v56 = vld [vmem:[%s6007_s4 + $0x6] ss:$0 sm:$0xff] }
 0xdf7   :  { %5104 = vmatprep.subr.bf16.mxu1 %v5103_v57 }
 0xdfa   :  { %5106 = vmatpush3.bf16.msra.mxu1 %v5103_v57 }
 0xdfb   :  { %4930 = vmatprep.subr.mxu1 %v5300_v29 }
 0xec0   :  { %v4878_v1 = vpop.f32.mrb[10].mxu1 }
 0xec1   :  { %v2001_v2 = vadd.f32 %v4878_v1, %v4532_v11  ;;  %v1984_v3 = vpop.f32.mrb[11].mxu1 }
 0xec2   :  { %v2000_v4 = vadd.f32 %v4532_v11, %v1984_v3 }
 0xec3   :  { %v2003_v5 = vadd.f32 %v2001_v2, %v5435_v8 }
 0xec4   :  { %v2002_v6 = vadd.f32 %v2000_v4, %v5433_v7  ;;  %v211_v7 = vld [vmem:[%s6005_s2 + $0x8] sm:$0xff] }
 0xec5   :  { %v2009_v9 = vsel %vm141_vm7, %v2003_v5, 0.0  ;;  %v5083_v51 = vpack.c.bf16 %v213_v60, %v211_v7 }
 0xec6   :  { %2010 = vadd.xlane.f32.xlu0 %v2009_v9  ;;  %v2006_v10 = vsel %vm141_vm7, %v2002_v6, 0.0 }
 0xec7   :  { %2007 = vadd.xlane.f32.xlu1 %v2006_v10  ;;  %5084 = vmatprep.subr.bf16.mxu0 %v5083_v51 }
 0xec8   :  { %5086 = vmatpush3.bf16.msra.mxu0 %v5083_v51 }
 0xec9   :  { %5088 = vmatprep.subr.bf16.mxu0 %v5087_v30 }
 0xecc   :  { %5090 = vmatpush3.bf16.msra.mxu0 %v5087_v30 }
 0xf53   :  { %v2011_v15 = vpop.xlane.xlu0 %2010 }
 0xf54   :  { %v2013_v16 = vmul.f32 0.03125, %v2011_v15  ;;  %v2008_v17 = vpop.xlane.xlu1 %2007 }
 0xf55   :  { %v2012_v52 = vmul.f32 0.03125, %v2008_v17 }
 0xf56   :  { %v2015_v18 = vsub.f32 %v2003_v5, %v2013_v16 }
 0xf57   :  { %v2014_v19 = vsub.f32 %v2002_v6, %v2012_v52 }
 0xf58   :  { %v2017_v25 = vmul.f32 %v2015_v18, %v2015_v18 }
 0xf59   :  { %v2016_v12 = vmul.f32 %v2014_v19, %v2014_v19 }
 0xf5a   :  { %v2021_v26 = vsel %vm141_vm7, %v2017_v25, 0.0 }
 0xf5b   :  { %2022 = vadd.xlane.f32.xlu1 %v2021_v26  ;;  %v2018_v8 = vsel %vm141_vm7, %v2016_v12, 0.0  ;;  %v4538_v26 = vld [vmem:[%s6007_s4 + $0x3] ss:$0 sm:$0xff] }
 0xf5c   :  { %2019 = vadd.xlane.f32.xlu0 %v2018_v8 }
 0xfe8   :  { %v2023_v53 = vpop.xlane.xlu1 %2022 }
 0xfe9   :  { %v2025_v31 = vmul.f32 0.03125, %v2023_v53  ;;  %v2020_v32 = vpop.xlane.xlu0 %2019 }
 0xfea   :  { %v2024_v33 = vmul.f32 0.03125, %v2020_v32 }
 0xfeb   :  { %v2027_v34 = vadd.f32 1e-12, %v2025_v31 }
 0xfec   :  { %v2026_v35 = vadd.f32 1e-12, %v2024_v33 }
 0xfed   :  { %5212 = vrsqrt.f32 %v2027_v34 }
 0xfee   :  { %5214 = vrsqrt.f32 %v2026_v35 }
 0xff7   :  { %v5213_v36 = vpop.eup %5212 }
 0xff8   :  { %v5215_v38 = vpop.eup %5214  ;;  %v2031_v40 = vmul.f32 %v5213_v36, %v2015_v18 }
 0xff9   :  { %v2030_v41 = vmul.f32 %v5215_v38, %v2014_v19 }
 0xffa   :  { %v2037_v43 = vmul.f32 %v4533_v37, %v2031_v40 }
 0xffb   :  { %v2036_v44 = vmul.f32 %v4533_v37, %v2030_v41 }
 0xffc   :  { %v2043_v23 = vadd.f32 %v4534_v42, %v2037_v43  ;;  %v5704_v43 = vld [vmem:[%s6005_s2 + $0x50] sm:$0xff] }
 0xffd   :  { %v2042_v20 = vadd.f32 %v4534_v42, %v2036_v44  ;;  %v5699_v42 = vld [vmem:[%s6005_s2 + $0x40] sm:$0xff] }
 0xffe   :  { %v5107_v44 = vpack.c.bf16 %v5704_v43, %v5699_v42 }
 0xfff   :  { %4887 = vmatprep.mubr.msk.f32.mxu0 %vm141_vm7, %v2042_v20 }
0x1000   :  { %4888 = vmatmul.mubr.msk.f32.vlgmr.msra.gmra.mrb[20].mxu0 %vm141_vm7, %v2043_v23  ;;  %5108 = vmatprep.subr.bf16.mxu0 %v5107_v44 }
0x1001   :  { %5110 = vmatpush3.bf16.msra.mxu0 %v5107_v44 }
0x10d3   :  { %v4889_v59 = vpop.f32.mrb[20].mxu0 }
0x10d4   :  { %v2127_v61 = vadd.f32 %v4889_v59, %v4535_v58  ;;  %v2121_v62 = vpop.f32.mrb[21].mxu0 }
0x10d5   :  { %v2122_v63 = vadd.f32 %v4535_v58, %v2121_v62  ;;  %v4542_v58 = vld [vmem:[%s6007_s4 + $0x7] ss:$0 sm:$0xff] }
0x10d6   :  { %v2131_v0 = vmul.f32 %v2127_v61, %v2127_v61 }
0x10d7   :  { %v2130_v11 = vmul.f32 %v2122_v63, %v2122_v63 }
0x10d8   :  { %v2133_v1 = vmul.f32 %v2131_v0, %v2127_v61  ;;  %v4551_v0 = vld [vmem:[%s6007_s4 + $0x8] ss:$0 sm:$0xff] }
0x10d9   :  { %v2132_v2 = vmul.f32 %v2130_v11, %v2122_v63 }
0x10da   :  { %v2135_v3 = vmul.f32 0.044715, %v2133_v1 }
0x10db   :  { %v2134_v4 = vmul.f32 0.044715, %v2132_v2 }
0x10dc   :  { %v2137_v5 = vadd.f32 %v2135_v3, %v2127_v61 }
0x10dd   :  { %v2136_v6 = vadd.f32 %v2134_v4, %v2122_v63 }
0x10de   :  { %v2139_v9 = vmul.f32 0.7978846, %v2137_v5 }
0x10df   :  { %v2138_v10 = vmul.f32 0.7978846, %v2136_v6 }
0x10e0   :  { %5216 = vtanh.f32 %v2139_v9 }
0x10e1   :  { %5218 = vtanh.f32 %v2138_v10 }
0x10ea   :  { %v5217_v15 = vpop.eup %5216 }
0x10eb   :  { %v5219_v16 = vpop.eup %5218  ;;  %v2143_v17 = vadd.f32 1.0, %v5217_v15 }
0x10ec   :  { %v2142_v52 = vadd.f32 1.0, %v5219_v16 }
0x10ed   :  { %v2145_v18 = vmul.f32 0.5, %v2143_v17 }
0x10ee   :  { %v2144_v19 = vmul.f32 0.5, %v2142_v52 }
0x10ef   :  { %v2147_v12 = vmul.f32 %v2145_v18, %v2127_v61 }
0x10f0   :  { %v2146_v25 = vmul.f32 %v2144_v19, %v2122_v63 }
0x10f2   :  { %4906 = vmatprep.mubr.msk.f32.mxu1 %vm2161_vm10, %v2146_v25 }
0x10f3   :  { %4907 = vmatmul.mubr.msk.f32.vlgmr.msra.gmra.mrb[18].mxu1 %vm2161_vm10, %v2147_v12 }
0x10f4   :  { %4932 = vmatprep.mubr.msk.f32.mxu1 %vm5301_vm8, %v5300_v29 }
0x11c6   :  { %v4908_v8 = vpop.f32.mrb[18].mxu1 }
0x11c7   :  { %v2240_v7 = vadd.f32 %v4908_v8, %v4538_v26  ;;  %v2234_v60 = vpop.f32.mrb[19].mxu1 }
0x11c8   :  { %v2235_v51 = vadd.f32 %v4538_v26, %v2234_v60 }
0x11c9   :  { %v2244_v27 = vadd.f32 %v2240_v7, %v2043_v23  ;;  %v5716_v23 = vld [vmem:[%s6005_s2 + $0x70] sm:$0xff] }
0x11ca   :  { %v2243_v28 = vadd.f32 %v2235_v51, %v2042_v20  ;;  %v5711_v20 = vld [vmem:[%s6005_s2 + $0x60] sm:$0xff] }
0x11cb   :  { %v2250_v30 = vsel %vm141_vm7, %v2244_v27, 0.0  ;;  %v5111_v24 = vpack.c.bf16 %v5716_v23, %v5711_v20 }
0x11cc   :  { %2251 = vadd.xlane.f32.xlu1 %v2250_v30  ;;  %v2247_v53 = vsel %vm141_vm7, %v2243_v28, 0.0 }
0x11cd   :  { %2248 = vadd.xlane.f32.xlu0 %v2247_v53  ;;  %5112 = vmatprep.subr.bf16.mxu0 %v5111_v24 }
0x11ce   :  { %5114 = vmatpush3.bf16.msra.mxu0 %v5111_v24 }
0x11cf   :  { %4920 = vmatprep.subr.mxu0 %v5300_v29 }
0x1259   :  { %v2252_v31 = vpop.xlane.xlu1 %2251 }
0x125a   :  { %v2254_v32 = vmul.f32 0.03125, %v2252_v31  ;;  %v2249_v33 = vpop.xlane.xlu0 %2248 }
0x125b   :  { %v2253_v34 = vmul.f32 0.03125, %v2249_v33 }
0x125c   :  { %v2256_v35 = vsub.f32 %v2244_v27, %v2254_v32 }
0x125d   :  { %v2255_v36 = vsub.f32 %v2243_v28, %v2253_v34 }
0x125e   :  { %v2258_v37 = vmul.f32 %v2256_v35, %v2256_v35 }
0x125f   :  { %v2257_v38 = vmul.f32 %v2255_v36, %v2255_v36 }
0x1260   :  { %v2262_v40 = vsel %vm141_vm7, %v2258_v37, 0.0 }
0x1261   :  { %2263 = vadd.xlane.f32.xlu1 %v2262_v40  ;;  %v2259_v41 = vsel %vm141_vm7, %v2257_v38, 0.0 }
0x1262   :  { %2260 = vadd.xlane.f32.xlu0 %v2259_v41 }
0x12ee   :  { %v2264_v45 = vpop.xlane.xlu1 %2263 }
0x12ef   :  { %v2266_v46 = vmul.f32 0.03125, %v2264_v45  ;;  %v2261_v47 = vpop.xlane.xlu0 %2260 }
0x12f0   :  { %v2265_v48 = vmul.f32 0.03125, %v2261_v47 }
0x12f1   :  { %v2268_v49 = vadd.f32 1e-12, %v2266_v46 }
0x12f2   :  { %v2267_v50 = vadd.f32 1e-12, %v2265_v48 }
0x12f3   :  { %5220 = vrsqrt.f32 %v2268_v49 }
0x12f4   :  { %5222 = vrsqrt.f32 %v2267_v50 }
0x12fd   :  { %v5221_v54 = vpop.eup %5220 }
0x12fe   :  { %v5223_v55 = vpop.eup %5222  ;;  %v2272_v13 = vmul.f32 %v5221_v54, %v2256_v35 }
0x12ff   :  { %v2271_v57 = vmul.f32 %v5223_v55, %v2255_v36 }
0x1300   :  { %v2278_v59 = vmul.f32 %v4541_v56, %v2272_v13 }
0x1301   :  { %v2277_v61 = vmul.f32 %v4541_v56, %v2271_v57 }
0x1302   :  { %v5729_v63 = vadd.f32 %v4542_v58, %v2278_v59 }
0x1303   :  { %v5727_v62 = vadd.f32 %v4542_v58, %v2277_v61 }
0x1305   :  { %4917 = vmatprep.mubr.msk.f32.mxu0 %vm141_vm7, %v5727_v62 }
0x1306   :  { %4918 = vmatmul.mubr.msk.f32.vlgmr.msra.gmra.mrb[22].mxu0 %vm141_vm7, %v5729_v63 }
0x1307   :  { %4922 = vmatprep.mubr.msk.f32.mxu0 %vm5301_vm8, %v5300_v29 }
0x13d9   :  { %v4919_v11 = vpop.f32.mrb[22].mxu0 }
0x13da   :  { %v5740_v1 = vadd.f32 %v4919_v11, %v4551_v0  ;;  %v2371_v2 = vpop.f32.mrb[23].mxu0 }
0x13db   :  { %v5742_v3 = vadd.f32 %v4551_v0, %v2371_v2 }
0x13dc   :  { %2458 = vrot.lane.b32.xlu1 %v5740_v1, %s5302_s6 }
0x13dd   :  { %2381 = vrot.lane.b32.xlu0 %v5742_v3, %s5302_s6 }
0x144e   :  { %v2459_v5 = vpop.permute.xlu1 %2458 }
0x144f   :  { %v2382_v4 = vpop.permute.xlu0 %2381 }
0x1450   :  { %4921 = vmatpush3.xpose.msk.msra.mxu0 %vm307_vm9, %v2382_v4 }
0x1451   :  { %4925 = vmatprep.subr.mxu0 %v5300_v29 }
0x1453   :  { %4923 = vmatmul.mubr.msk.f32.vlgmr.msra.gmra.mrb[24].mxu0 %vm307_vm9, %v5742_v3 }
0x1454   :  { %4926 = vmatpush3.xpose.msk.msra.mxu0 %vm307_vm9, %v2459_v5  ;;  %4927 = vmatprep.mubr.msk.f32.mxu0 %vm5301_vm8, %v5300_v29 }
0x1455   :  { %4935 = vmatprep.subr.mxu0 %v5300_v29 }
0x1457   :  { %4928 = vmatmul.mubr.msk.f32.vlgmr.msra.gmra.mrb[26].mxu0 %vm307_vm9, %v5740_v1 }
0x1458   :  { %4937 = vmatprep.mubr.msk.f32.mxu0 %vm5301_vm8, %v5300_v29 }
0x1526   :  { %v2453_v6 = vpop.f32.mrb[24].mxu0 }
0x1527   :  { %v4924_v9 = vpop.f32.mrb[25].mxu0  ;;  %v2534_v8 = vmul.f32 0.35355338, %v2453_v6 }
0x1529   :  { %v2536_v7 = vadd.f32 %v2534_v8, %v5490_v39 }
0x152a   :  { %v2530_v10 = vpop.f32.mrb[26].mxu0 }
0x152b   :  { %v2535_v15 = vmul.f32 0.35355338, %v2530_v10  ;;  %v4929_v16 = vpop.f32.mrb[27].mxu0  ;;  %v2538_v60 = vsel %vm307_vm9, %v2536_v7, -inf }
0x152d   :  { %v2537_v17 = vadd.f32 %v2535_v15, %v5475_v22 }
0x152f   :  { %v2541_v52 = vsel %vm307_vm9, %v2537_v17, -inf }
0x1530   :  { %2542 = vmax.xlane.f32.xlu1 %v2541_v52 }
0x1541   :  { %2792 = vrot.lane.b32.xlu1 %v5740_v1, %s5303_s7 }
0x1545   :  { %2790 = vrot.lane.b32.xlu1 %v5740_v1, %s5304_s8 }
0x15bd   :  { %v2543_v18 = vpop.xlane.xlu1 %2542 }
0x15be   :  { %v2545_v19 = vsub.f32 %v2537_v17, %v2543_v18 }
0x15c0   :  { %v2548_v25 = vmul.f32 1.442695, %v2545_v19 }
0x15c1   :  { %v2793_v30 = vpop.permute.xlu1 %2792 }
0x15c2   :  { %5224 = vpow2.f32 %v2548_v25 }
0x15c5   :  { %v2791_v31 = vpop.permute.xlu1 %2790 }
0x15cc   :  { %v5225_v12 = vpop.eup %5224 }
0x15cd   :  { %v2553_v26 = vsel %vm307_vm9, %v5225_v12, 0.0 }
0x15ce   :  { %2554 = vadd.xlane.f32.xlu0 %v2553_v26 }
0x15e4   :  { %2636 = vrot.lane.b32.xlu0 %v5740_v1, %s5305_s9 }
0x1603   :  { %2539 = vmax.xlane.f32.xlu0 %v2538_v60 }
0x1619   :  { %2560 = vrot.lane.b32.xlu0 %v5742_v3, %s5305_s9 }
0x161d   :  { %2712 = vrot.lane.b32.xlu0 %v5742_v3, %s5304_s8 }
0x165b   :  { %v2555_v51 = vpop.xlane.xlu0 %2554 }
0x165c   :  { %5226 = vrcp.f32 %v2555_v51 }
0x165f   :  { %v2637_v27 = vpop.permute.xlu0 %2636 }
0x1660   :  { %4936 = vmatpush3.msra.mxu0 %v2637_v27 }
0x1661   :  { %4945 = vmatprep.subr.mxu0 %v5300_v29 }
0x1666   :  { %v5227_v28 = vpop.eup %5226 }
0x1667   :  { %v2559_v53 = vmul.f32 %v5227_v28, %v5225_v12 }
0x1669   :  { %4938 = vmatmul.mubr.msk.f32.vlgmr.msra.gmra.mrb[28].mxu0 %vm307_vm9, %v2559_v53 }
0x166a   :  { %4946 = vmatpush3.xpose.msk.msra.mxu0 %vm307_vm9, %v2793_v30  ;;  %4947 = vmatprep.mubr.msk.f32.mxu0 %vm5301_vm8, %v5300_v29 }
0x166b   :  { %4955 = vmatprep.subr.mxu0 %v5300_v29 }
0x166d   :  { %4948 = vmatmul.mubr.msk.f32.vlgmr.msra.gmra.mrb[30].mxu0 %vm307_vm9, %v2791_v31 }
0x166e   :  { %4957 = vmatprep.mubr.msk.f32.mxu0 %vm5301_vm8, %v5300_v29 }
0x1690   :  { %v2540_v32 = vpop.xlane.xlu0 %2539 }
0x1691   :  { %v2544_v33 = vsub.f32 %v2536_v7, %v2540_v32 }
0x1693   :  { %v2546_v34 = vmul.f32 1.442695, %v2544_v33 }
0x1694   :  { %v2561_v35 = vpop.permute.xlu0 %2560 }
0x1695   :  { %5228 = vpow2.f32 %v2546_v34  ;;  %4931 = vmatpush3.msra.mxu1 %v2561_v35 }
0x1696   :  { %4940 = vmatprep.subr.mxu1 %v5300_v29 }
0x1698   :  { %v2713_v46 = vpop.permute.xlu0 %2712 }
0x169f   :  { %v5229_v36 = vpop.eup %5228 }
0x16a0   :  { %v2550_v37 = vsel %vm307_vm9, %v5229_v36, 0.0 }
0x16a1   :  { %2551 = vadd.xlane.f32.xlu1 %v2550_v37 }
0x16b2   :  { %2714 = vrot.lane.b32.xlu1 %v5742_v3, %s5303_s7 }
0x172e   :  { %v2552_v38 = vpop.xlane.xlu1 %2551 }
0x172f   :  { %5230 = vrcp.f32 %v2552_v38 }
0x1732   :  { %v2715_v44 = vpop.permute.xlu1 %2714 }
0x1739   :  { %v5231_v40 = vpop.eup %5230 }
0x173a   :  { %v2558_v41 = vmul.f32 %v5231_v40, %v5229_v36 }
0x173c   :  { %4933 = vmatmul.mubr.msk.f32.vlgmr.msra.gmra.mrb[20].mxu1 %vm307_vm9, %v2558_v41  ;;  %v5789_v24 = vpop.f32.mrb[28].mxu0 }
0x173d   :  { %4941 = vmatpush3.xpose.msk.msra.mxu1 %vm307_vm9, %v2715_v44  ;;  %v4939_v45 = vpop.f32.mrb[29].mxu0  ;;  %4942 = vmatprep.mubr.msk.f32.mxu1 %vm5301_vm8, %v5300_v29 }
0x173e   :  { %4950 = vmatprep.subr.mxu1 %v5300_v29 }
0x1740   :  { %4943 = vmatmul.mubr.msk.f32.vlgmr.msra.gmra.mrb[22].mxu1 %vm307_vm9, %v2713_v46  ;;  %v2864_v47 = vpop.f32.mrb[30].mxu0 }
0x1741   :  { %v2869_v48 = vmul.f32 0.35355338, %v2864_v47  ;;  %v4949_v49 = vpop.f32.mrb[31].mxu0  ;;  %4952 = vmatprep.mubr.msk.f32.mxu1 %vm5301_vm8, %v5300_v29 }
0x1743   :  { %v2871_v50 = vadd.f32 %v2869_v48, %v5475_v22 }
0x1745   :  { %v2875_v54 = vsel %vm307_vm9, %v2871_v50, -inf }
0x1746   :  { %2876 = vmax.xlane.f32.xlu1 %v2875_v54 }
0x1757   :  { %3218 = vrot.lane.b32.xlu1 %v5742_v3, %s5306_s10 }
0x175b   :  { %3216 = vrot.lane.b32.xlu1 %v5742_v3, %s5307_s11 }
0x175f   :  { %3294 = vrot.lane.b32.xlu1 %v5740_v1, %s5307_s11 }
0x17d3   :  { %v2877_v56 = vpop.xlane.xlu1 %2876 }
0x17d4   :  { %v2879_v55 = vsub.f32 %v2871_v50, %v2877_v56 }
0x17d6   :  { %v2882_v13 = vmul.f32 1.442695, %v2879_v55 }
0x17d8   :  { %5232 = vpow2.f32 %v2882_v13 }
0x17e2   :  { %v5233_v57 = vpop.eup %5232 }
0x17e3   :  { %v2887_v58 = vsel %vm307_vm9, %v5233_v57, 0.0 }
0x17e4   :  { %2888 = vadd.xlane.f32.xlu0 %v2887_v58 }
0x17fa   :  { %2970 = vrot.lane.b32.xlu0 %v5740_v1, %s5308_s12 }
0x17fe   :  { %3296 = vrot.lane.b32.xlu0 %v5740_v1, %s5306_s10 }
0x180f   :  { %v5811_v59 = vpop.f32.mrb[20].mxu1 }
0x1810   :  { %v4934_v61 = vpop.f32.mrb[21].mxu1 }
0x1813   :  { %v2786_v0 = vpop.f32.mrb[22].mxu1 }
0x1814   :  { %v2868_v11 = vmul.f32 0.35355338, %v2786_v0  ;;  %v4944_v2 = vpop.f32.mrb[23].mxu1 }
0x1816   :  { %v2870_v4 = vadd.f32 %v2868_v11, %v5490_v39 }
0x1818   :  { %v2872_v5 = vsel %vm307_vm9, %v2870_v4, -inf }
0x181d   :  { %2873 = vmax.xlane.f32.xlu0 %v2872_v5 }
0x1833   :  { %2894 = vrot.lane.b32.xlu0 %v5742_v3, %s5308_s12 }
0x1837   :  { %3132 = vrot.lane.b32.xlu0 %v5699_v42, %s5309_s13  ;;  %v3219_v42 = vpop.permute.xlu1 %3218 }
0x183b   :  { %3398 = vrot.lane.b32.xlu0 %v5742_v3, %s5310_s14  ;;  %v3217_v16 = vpop.permute.xlu1 %3216 }
0x183f   :  { %3474 = vrot.lane.b32.xlu0 %v5740_v1, %s5310_s14  ;;  %v3295_v17 = vpop.permute.xlu1 %3294 }
0x1843   :  { %3551 = vrot.lane.b32.xlu0 %v5711_v20, %s5309_s13 }
0x1847   :  { %3639 = vrot.lane.b32.xlu0 %v5742_v3, %s5311_s15 }
0x184b   :  { %3637 = vrot.lane.b32.xlu0 %v5742_v3, %s5312_s16 }
0x1871   :  { %v2889_v6 = vpop.xlane.xlu0 %2888 }
0x1872   :  { %5234 = vrcp.f32 %v2889_v6 }
0x1875   :  { %v2971_v9 = vpop.permute.xlu0 %2970 }
0x1876   :  { %4956 = vmatpush3.msra.mxu0 %v2971_v9 }
0x1877   :  { %4970 = vmatprep.subr.mxu0 %v5300_v29 }
0x1879   :  { %v3297_v20 = vpop.permute.xlu0 %3296 }
0x187c   :  { %v5235_v10 = vpop.eup %5234 }
0x187d   :  { %v2893_v15 = vmul.f32 %v5235_v10, %v5233_v57 }
0x187f   :  { %4958 = vmatmul.mubr.msk.f32.vlgmr.msra.gmra.mrb[32].mxu0 %vm307_vm9, %v2893_v15 }
0x1880   :  { %4971 = vmatpush3.xpose.msk.msra.mxu0 %vm307_vm9, %v3219_v42  ;;  %4972 = vmatprep.mubr.msk.f32.mxu0 %vm5301_vm8, %v5300_v29 }
0x1881   :  { %4975 = vmatprep.subr.mxu0 %v5300_v29 }
0x1883   :  { %4973 = vmatmul.mubr.msk.f32.vlgmr.msra.gmra.mrb[34].mxu0 %vm307_vm9, %v3217_v16 }
0x1884   :  { %4976 = vmatpush3.xpose.msk.msra.mxu0 %vm307_vm9, %v3297_v20  ;;  %4977 = vmatprep.mubr.msk.f32.mxu0 %vm5301_vm8, %v5300_v29 }
0x1885   :  { %4985 = vmatprep.subr.mxu0 %v5300_v29 }
0x1887   :  { %4978 = vmatmul.mubr.msk.f32.vlgmr.msra.gmra.mrb[36].mxu0 %vm307_vm9, %v3295_v17 }
0x1888   :  { %4987 = vmatprep.mubr.msk.f32.mxu0 %vm5301_vm8, %v5300_v29 }
0x18aa   :  { %v2874_v52 = vpop.xlane.xlu0 %2873 }
0x18ab   :  { %v2878_v18 = vsub.f32 %v2870_v4, %v2874_v52 }
0x18ad   :  { %v2880_v19 = vmul.f32 1.442695, %v2878_v18 }
0x18ae   :  { %v2895_v25 = vpop.permute.xlu0 %2894 }
0x18af   :  { %5236 = vpow2.f32 %v2880_v19  ;;  %4951 = vmatpush3.msra.mxu1 %v2895_v25 }
0x18b2   :  { %v3133_v12 = vpop.permute.xlu0 %3132 }
0x18b6   :  { %v5843_v26 = vpop.permute.xlu0 %3398 }
0x18b9   :  { %v5237_v8 = vpop.eup %5236 }
0x18ba   :  { %v3475_v7 = vpop.permute.xlu0 %3474  ;;  %v2884_v60 = vsel %vm307_vm9, %v5237_v8, 0.0 }
0x18bb   :  { %2885 = vadd.xlane.f32.xlu1 %v2884_v60  ;;  %4986 = vmatpush3.msra.mxu0 %v3475_v7 }
0x18bc   :  { %4995 = vmatprep.subr.mxu0 %v5300_v29 }
0x18be   :  { %v3552_v11 = vpop.permute.xlu0 %3551 }
0x18c2   :  { %v3640_v2 = vpop.permute.xlu0 %3639 }
0x1948   :  { %v2886_v51 = vpop.xlane.xlu1 %2885 }
0x1949   :  { %5238 = vrcp.f32 %v2886_v51 }
0x1952   :  { %v3042_v27 = vpop.f32.mrb[32].mxu0 }
0x1953   :  { %v5239_v28 = vpop.eup %5238  ;;  %v4959_v30 = vpop.f32.mrb[33].mxu0 }
0x1954   :  { %v2892_v53 = vmul.f32 %v5239_v28, %v5237_v8 }
0x1956   :  { %4953 = vmatmul.mubr.msk.f32.vlgmr.msra.gmra.mrb[24].mxu1 %vm307_vm9, %v2892_v53  ;;  %v3290_v31 = vpop.f32.mrb[34].mxu0 }
0x1957   :  { %v3372_v32 = vmul.f32 0.35355338, %v3290_v31  ;;  %v4974_v33 = vpop.f32.mrb[35].mxu0 }
0x1959   :  { %v3374_v34 = vadd.f32 %v3372_v32, %v5490_v39 }
0x195a   :  { %v3368_v35 = vpop.f32.mrb[36].mxu0 }
0x195b   :  { %v3373_v36 = vmul.f32 0.35355338, %v3368_v35  ;;  %v4979_v37 = vpop.f32.mrb[37].mxu0  ;;  %v3376_v38 = vsel %vm307_vm9, %v3374_v34, -inf }
0x195c   :  { %3377 = vmax.xlane.f32.xlu1 %v3376_v38 }
0x195d   :  { %v3375_v40 = vadd.f32 %v3373_v36, %v5475_v22 }
0x195f   :  { %v3379_v41 = vsel %vm307_vm9, %v3375_v40, -inf }
0x1960   :  { %3380 = vmax.xlane.f32.xlu1 %v3379_v41 }
0x19e9   :  { %v3378_v44 = vpop.xlane.xlu1 %3377 }
0x19ea   :  { %v3382_v45 = vsub.f32 %v3374_v34, %v3378_v44 }
0x19ec   :  { %v3384_v46 = vmul.f32 1.442695, %v3382_v45 }
0x19ed   :  { %v3381_v47 = vpop.xlane.xlu1 %3380 }
0x19ee   :  { %5240 = vpow2.f32 %v3384_v46  ;;  %v3383_v48 = vsub.f32 %v3375_v40, %v3381_v47 }
0x19f0   :  { %v3386_v49 = vmul.f32 1.442695, %v3383_v48 }
0x19f2   :  { %5242 = vpow2.f32 %v3386_v49 }
0x19f8   :  { %v5241_v50 = vpop.eup %5240 }
0x19f9   :  { %v3388_v54 = vsel %vm307_vm9, %v5241_v50, 0.0 }
0x19fa   :  { %3389 = vadd.xlane.f32.xlu1 %v3388_v54 }
0x19fc   :  { %v5243_v56 = vpop.eup %5242 }
0x19fd   :  { %v3391_v55 = vsel %vm307_vm9, %v5243_v56, 0.0 }
0x19fe   :  { %3392 = vadd.xlane.f32.xlu1 %v3391_v55 }
0x1a0f   :  { %3047 = vrot.lane.b32.xlu1 %v5704_v43, %s5309_s13 }
0x1a13   :  { %3717 = vrot.lane.b32.xlu1 %v5740_v1, %s5311_s15 }
0x1a17   :  { %3715 = vrot.lane.b32.xlu1 %v5740_v1, %s5312_s16 }
0x1a29   :  { %v2966_v13 = vpop.f32.mrb[24].mxu1 }
0x1a2a   :  { %v4954_v57 = vpop.f32.mrb[25].mxu1  ;;  %4962 = vmatprep.mubr.msk.f32.mxu1 %vm307_vm9, %v2966_v13 }
0x1a87   :  { %v3390_v58 = vpop.xlane.xlu1 %3389 }
0x1a8b   :  { %v3393_v61 = vpop.xlane.xlu1 %3392 }
0x1a8c   :  { %5244 = vrcp.f32 %v3393_v61 }
0x1a8d   :  { %5246 = vrcp.f32 %v3390_v58 }
0x1a8f   :  { %v3048_v0 = vpop.permute.xlu1 %3047 }
0x1a90   :  { %4960 = vmatprep.subr.mxu1 %v3048_v0 }
0x1a91   :  { %4961 = vmatpush3.msra.mxu1 %v3048_v0 }
0x1a92   :  { %4963 = vmatmul.mubr.msk.f32.vlgmr.msra.gmra.mrb[26].mxu1 %vm307_vm9, %v3042_v27  ;;  %4965 = vmatprep.subr.mxu1 %v3133_v12 }
0x1a93   :  { %4967 = vmatprep.mubr.msk.f32.mxu1 %vm307_vm9, %v5811_v59  ;;  %4966 = vmatpush3.msra.mxu1 %v3133_v12  ;;  %v3638_v59 = vpop.permute.xlu0 %3637  ;;  %v3718_v42 = vpop.permute.xlu1 %3717 }
0x1a94   :  { %4980 = vmatprep.subr.mxu1 %v5300_v29 }
0x1a96   :  { %v5245_v43 = vpop.eup %5244 }
0x1a97   :  { %v3397_v4 = vmul.f32 %v5245_v43, %v5243_v56  ;;  %v5247_v5 = vpop.eup %5246  ;;  %v3716_v19 = vpop.permute.xlu1 %3715 }
0x1a98   :  { %v3396_v6 = vmul.f32 %v5247_v5, %v5241_v50 }
0x1a99   :  { %4988 = vmatmul.mubr.msk.f32.vlgmr.msra.gmra.mrb[38].mxu0 %vm307_vm9, %v3397_v4 }
0x1a9a   :  { %4996 = vmatpush3.xpose.msk.msra.mxu0 %vm307_vm9, %v3640_v2  ;;  %4968 = vmatmul.mubr.msk.f32.vlgmr.msra.gmra.mrb[26].mxu1 %vm307_vm9, %v5789_v24 }
0x1a9b   :  { %4981 = vmatpush3.msra.mxu1 %v5843_v26  ;;  %4997 = vmatprep.mubr.msk.f32.mxu0 %vm5301_vm8, %v5300_v29 }
0x1a9c   :  { %4982 = vmatprep.mubr.msk.f32.mxu1 %vm5301_vm8, %v5300_v29  ;;  %4990 = vmatprep.subr.mxu1 %v3552_v11 }
0x1a9d   :  { %4998 = vmatmul.mubr.msk.f32.vlgmr.msra.gmra.mrb[40].mxu0 %vm307_vm9, %v3638_v59  ;;  %5005 = vmatprep.subr.mxu0 %v5300_v29  ;;  %v4546_v59 = vld [vmem:[%s6005_s2 + $0x58] sm:$0xff] }
0x1a9e   :  { %4983 = vmatmul.mubr.msk.f32.vlgmr.msra.gmra.mrb[28].mxu1 %vm307_vm9, %v3396_v6  ;;  %5007 = vmatprep.mubr.msk.f32.mxu0 %vm5301_vm8, %v5300_v29 }
0x1a9f   :  { %4991 = vmatpush3.msra.mxu1 %v3552_v11 }
0x1aa0   :  { %5000 = vmatprep.subr.mxu1 %v5300_v29 }
0x1b6c   :  { %v3546_v24 = vpop.f32.mrb[38].mxu0 }
0x1b6d   :  { %v4989_v9 = vpop.f32.mrb[39].mxu0 }
0x1b6e   :  { %v4550_v9 = vld [vmem:[%s6005_s2 + $0x78] sm:$0xff] }
0x1b70   :  { %v3711_v10 = vpop.f32.mrb[40].mxu0 }
0x1b71   :  { %v3793_v15 = vmul.f32 0.35355338, %v3711_v10  ;;  %v3470_v16 = vpop.f32.mrb[28].mxu1  ;;  %v4999_v20 = vpop.f32.mrb[41].mxu0 }
0x1b72   :  { %v4984_v17 = vpop.f32.mrb[29].mxu1  ;;  %4992 = vmatprep.mubr.msk.f32.mxu1 %vm307_vm9, %v3470_v16 }
0x1b73   :  { %4993 = vmatmul.mubr.msk.f32.vlgmr.msra.gmra.mrb[26].mxu1 %vm307_vm9, %v3546_v24  ;;  %v3795_v52 = vadd.f32 %v3793_v15, %v5490_v39  ;;  %v4548_v24 = vld [vmem:[%s6005_s2 + $0x68] sm:$0xff] }
0x1b74   :  { %5001 = vmatpush3.xpose.msk.msra.mxu1 %vm307_vm9, %v3718_v42  ;;  %5002 = vmatprep.mubr.msk.f32.mxu1 %vm5301_vm8, %v5300_v29  ;;  %v5119_v42 = vpack.c.bf16 %v4550_v9, %v4548_v24 }
0x1b75   :  { %v3797_v18 = vsel %vm307_vm9, %v3795_v52, -inf  ;;  %5010 = vmatprep.subr.mxu1 %v5300_v29 }
0x1b76   :  { %3798 = vmax.xlane.f32.xlu0 %v3797_v18 }
0x1b77   :  { %5003 = vmatmul.mubr.msk.f32.vlgmr.msra.gmra.mrb[30].mxu1 %vm307_vm9, %v3716_v19  ;;  %v4587_v19 = vld [vmem:[%s6007_s4 + $0xc] ss:$0 sm:$0xff] }
0x1b78   :  { %5012 = vmatprep.mubr.msk.f32.mxu1 %vm5301_vm8, %v5300_v29 }
0x1c03   :  { %v3799_v25 = vpop.xlane.xlu0 %3798 }
0x1c04   :  { %v3803_v12 = vsub.f32 %v3795_v52, %v3799_v25 }
0x1c06   :  { %v3805_v26 = vmul.f32 1.442695, %v3803_v12 }
0x1c08   :  { %5248 = vpow2.f32 %v3805_v26 }
0x1c12   :  { %v5249_v39 = vpop.eup %5248 }
0x1c13   :  { %v3809_v8 = vsel %vm307_vm9, %v5249_v39, 0.0 }
0x1c14   :  { %3810 = vadd.xlane.f32.xlu0 %v3809_v8 }
0x1c4a   :  { %v3789_v7 = vpop.f32.mrb[30].mxu1 }
0x1c4b   :  { %v3794_v60 = vmul.f32 0.35355338, %v3789_v7  ;;  %v5004_v51 = vpop.f32.mrb[31].mxu1 }
0x1c4d   :  { %v3796_v27 = vadd.f32 %v3794_v60, %v5475_v22 }
0x1c4f   :  { %v3800_v28 = vsel %vm307_vm9, %v3796_v27, -inf }
0x1c50   :  { %3801 = vmax.xlane.f32.xlu1 %v3800_v28  ;;  %v4212_v28 = vld [vmem:[%s6006_s3 + $0x98] sm:$0xff] }
0x1c61   :  { %3819 = vrot.lane.b32.xlu1 %v5742_v3, %s5313_s17 }
0x1c65   :  { %3972 = vrot.lane.b32.xlu1 %v5716_v23, %s5309_s13 }
0x1ca1   :  { %v3811_v30 = vpop.xlane.xlu0 %3810 }
0x1ca2   :  { %5250 = vrcp.f32 %v3811_v30 }
0x1cac   :  { %v5251_v31 = vpop.eup %5250 }
0x1cad   :  { %v3817_v34 = vmul.f32 %v5251_v31, %v5249_v39  ;;  %v4588_v39 = vld [vmem:[%s6007_s4 + $0xd] ss:$0 sm:$0xff] }
0x1cae   :  { %v4214_v31 = vld [vmem:[%s6006_s3 + $0xa8] sm:$0xff] }
0x1cdd   :  { %v3802_v53 = vpop.xlane.xlu1 %3801 }
0x1cde   :  { %v3804_v32 = vsub.f32 %v3796_v27, %v3802_v53  ;;  %v4211_v27 = vld [vmem:[%s6006_s3 + $0x90] sm:$0xff]  ;;  %v4213_v53 = vld [vmem:[%s6006_s3 + $0xa0] sm:$0xff] }
0x1cdf   :  { %v5123_v30 = vpack.c.bf16 %v4212_v28, %v4211_v27 }
0x1ce0   :  { %v3807_v33 = vmul.f32 1.442695, %v3804_v32  ;;  %v4215_v32 = vld [vmem:[%s6006_s3 + $0xb0] sm:$0xff] }
0x1ce1   :  { %v3820_v35 = vpop.permute.xlu1 %3819 }
0x1ce2   :  { %5252 = vpow2.f32 %v3807_v33  ;;  %5006 = vmatpush3.msra.mxu0 %v3820_v35  ;;  %v4216_v33 = vld [vmem:[%s6006_s3 + $0xb8] sm:$0xff]  ;;  %v4217_v35 = vld [vmem:[%s6006_s3 + $0xc0] sm:$0xff] }
0x1ce3   :  { %5008 = vmatmul.mubr.msk.f32.vlgmr.msra.gmra.mrb[42].mxu0 %vm307_vm9, %v3817_v34  ;;  %v5131_v34 = vpack.c.bf16 %v4216_v33, %v4215_v32 }
0x1ce5   :  { %v3973_v3 = vpop.permute.xlu1 %3972 }
0x1cec   :  { %v5253_v22 = vpop.eup %5252 }
0x1ced   :  { %v3812_v36 = vsel %vm307_vm9, %v5253_v22, 0.0 }
0x1cee   :  { %3813 = vadd.xlane.f32.xlu0 %v3812_v36 }
0x1d04   :  { %3895 = vrot.lane.b32.xlu0 %v5740_v1, %s5313_s17  ;;  %v4586_v1 = vld [vmem:[%s6007_s4 + $0x9] ss:$0 sm:$0xff] }
0x1d7b   :  { %v3814_v23 = vpop.xlane.xlu0 %3813 }
0x1d7c   :  { %5254 = vrcp.f32 %v3814_v23  ;;  %v4589_v23 = vld [vmem:[%s6007_s4 + $0xa] ss:$0 sm:$0xff] }
0x1d7f   :  { %v3896_v37 = vpop.permute.xlu0 %3895 }
0x1d80   :  { %5011 = vmatpush3.msra.mxu1 %v3896_v37 }
0x1d81   :  { %5015 = vmatprep.subr.mxu1 %v3973_v3 }
0x1d86   :  { %v5255_v38 = vpop.eup %5254 }
0x1d87   :  { %v3818_v40 = vmul.f32 %v5255_v38, %v5253_v22  ;;  %v4218_v22 = vld [vmem:[%s6006_s3 + $0xc8] sm:$0xff] }
0x1d88   :  { %v5135_v36 = vpack.c.bf16 %v4218_v22, %v4217_v35 }
0x1d89   :  { %5013 = vmatmul.mubr.msk.f32.vlgmr.msra.gmra.mrb[32].mxu1 %vm307_vm9, %v3818_v40 }
0x1d8a   :  { %5016 = vmatpush3.msra.mxu1 %v3973_v3 }
0x1d8b   :  { %5124 = vmatprep.subr.bf16.mxu1 %v5123_v30 }
0x1db6   :  { %v3891_v41 = vpop.f32.mrb[42].mxu0 }
0x1db7   :  { %v5009_v44 = vpop.f32.mrb[43].mxu0  ;;  %5017 = vmatprep.mubr.msk.f32.mxu1 %vm307_vm9, %v3891_v41 }
0x1e5c   :  { %v3967_v45 = vpop.f32.mrb[32].mxu1 }
0x1e5d   :  { %v5014_v46 = vpop.f32.mrb[33].mxu1  ;;  %5018 = vmatmul.mubr.msk.f32.vlgmr.msra.gmra.mrb[26].mxu1 %vm307_vm9, %v3967_v45 }
0x1e5e   :  { %5126 = vmatpush3.bf16.msra.mxu1 %v5123_v30 }
0x1f30   :  { %v5019_v47 = vpop.f32.mrb[26].mxu1 }
0x1f31   :  { %v4064_v48 = vadd.f32 %v5019_v47, %v4586_v1  ;;  %v4047_v49 = vpop.f32.mrb[27].mxu1 }
0x1f32   :  { %v4063_v50 = vadd.f32 %v4586_v1, %v4047_v49 }
0x1f33   :  { %v4066_v54 = vadd.f32 %v4064_v48, %v5729_v63 }
0x1f34   :  { %v4065_v56 = vadd.f32 %v4063_v50, %v5727_v62  ;;  %v4544_v62 = vld [vmem:[%s6005_s2 + $0x48] sm:$0xff] }
0x1f35   :  { %v4072_v55 = vsel %vm141_vm7, %v4066_v54, 0.0  ;;  %v5115_v6 = vpack.c.bf16 %v4546_v59, %v4544_v62 }
0x1f36   :  { %4073 = vadd.xlane.f32.xlu0 %v4072_v55  ;;  %v4069_v13 = vsel %vm141_vm7, %v4065_v56, 0.0 }
0x1f37   :  { %4070 = vadd.xlane.f32.xlu1 %v4069_v13  ;;  %5116 = vmatprep.subr.bf16.mxu0 %v5115_v6 }
0x1f38   :  { %5118 = vmatpush3.bf16.msra.mxu0 %v5115_v6 }
0x1f39   :  { %5120 = vmatprep.subr.bf16.mxu0 %v5119_v42 }
0x1f3c   :  { %5122 = vmatpush3.bf16.msra.mxu0 %v5119_v42 }
0x1f3d   :  { %5050 = vmatprep.subr.mxu0 %v5300_v29 }
0x1fc3   :  { %v4074_v57 = vpop.xlane.xlu0 %4073 }
0x1fc4   :  { %v4076_v58 = vmul.f32 0.03125, %v4074_v57  ;;  %v4071_v61 = vpop.xlane.xlu1 %4070 }
0x1fc5   :  { %v4075_v0 = vmul.f32 0.03125, %v4071_v61 }
0x1fc6   :  { %v4078_v11 = vsub.f32 %v4066_v54, %v4076_v58 }
0x1fc7   :  { %v4077_v43 = vsub.f32 %v4065_v56, %v4075_v0 }
0x1fc8   :  { %v4080_v2 = vmul.f32 %v4078_v11, %v4078_v11 }
0x1fc9   :  { %v4079_v4 = vmul.f32 %v4077_v43, %v4077_v43 }
0x1fca   :  { %v4084_v5 = vsel %vm141_vm7, %v4080_v2, 0.0 }
0x1fcb   :  { %4085 = vadd.xlane.f32.xlu1 %v4084_v5  ;;  %v4081_v63 = vsel %vm141_vm7, %v4079_v4, 0.0 }
0x1fcc   :  { %4082 = vadd.xlane.f32.xlu0 %v4081_v63 }
0x2058   :  { %v4086_v10 = vpop.xlane.xlu1 %4085 }
0x2059   :  { %v4088_v15 = vmul.f32 0.03125, %v4086_v10  ;;  %v4083_v16 = vpop.xlane.xlu0 %4082 }
0x205a   :  { %v4087_v20 = vmul.f32 0.03125, %v4083_v16 }
0x205b   :  { %v4090_v17 = vadd.f32 1e-12, %v4088_v15 }
0x205c   :  { %v4089_v52 = vadd.f32 1e-12, %v4087_v20 }
0x205d   :  { %5256 = vrsqrt.f32 %v4090_v17 }
0x205e   :  { %5258 = vrsqrt.f32 %v4089_v52 }
0x2067   :  { %v5257_v18 = vpop.eup %5256 }
0x2068   :  { %v5259_v25 = vpop.eup %5258  ;;  %v4094_v12 = vmul.f32 %v5257_v18, %v4078_v11 }
0x2069   :  { %v4093_v26 = vmul.f32 %v5259_v25, %v4077_v43  ;;  %v4592_v43 = vld [vmem:[%s6007_s4 + $0xb] ss:$0 sm:$0xff]  ;;  %v5272_v25 = vld [vmem:[%s6004_s1] sm:$0x3] }
0x206a   :  { %v4100_v8 = vmul.f32 %v4587_v19, %v4094_v12  ;;  %v4378_v12 = vsel %vm4377_vm11, %v5272_v25, 0.0 }
0x206b   :  { %v4099_v7 = vmul.f32 %v4587_v19, %v4093_v26  ;;  %v4356_v26 = vsub.s32 1, %v5373_v14 }
0x206c   :  { %v4106_v51 = vadd.f32 %v4588_v39, %v4100_v8  ;;  %v4350_v8 = vrot.slane %v5272_v25, %v5472_v21  ;;  %v4595_v21 = vld [vmem:[%s6007_s4 + $0xe] ss:$0 sm:$0xff] }
0x206d   :  { %v4105_v60 = vadd.f32 %v4588_v39, %v4099_v7  ;;  %v4357_v39 = vrot.slane %v5272_v25, %v4356_v26  ;;  %v4390_v7 = vld [vmem:[%s6007_s4 + $0x12] sm:$0x1] }
0x206f   :  { %5028 = vmatprep.mubr.msk.f32.mxu0 %vm141_vm7, %v4105_v60 }
0x2070   :  { %5029 = vmatmul.mubr.msk.f32.vlgmr.msra.gmra.mrb[44].mxu0 %vm141_vm7, %v4106_v51 }
0x2071   :  { %5052 = vmatprep.mubr.msk.f32.mxu0 %vm5301_vm8, %v5300_v29  ;;  %v5127_v29 = vpack.c.bf16 %v4214_v31, %v4213_v53 }
0x2073   :  { %5128 = vmatprep.subr.bf16.mxu1 %v5127_v29 }
0x2074   :  { %5130 = vmatpush3.bf16.msra.mxu1 %v5127_v29 }
0x2075   :  { %5132 = vmatprep.subr.bf16.mxu1 %v5131_v34 }
0x2078   :  { %5134 = vmatpush3.bf16.msra.mxu1 %v5131_v34  ;;  %v4596_v34 = vld [vmem:[%s6007_s4 + $0xf] ss:$0 sm:$0xff]  ;;  %s5315_s4 = smov [#allocation2]  }
0x2079   :  { %5136 = vmatprep.subr.bf16.mxu1 %v5135_v36  ;;  %s4483_s24 = sshll.u32 %s5315_s4, 4  ;;  %s4484_s24 = int_to_ptr.vmem [resolvable:$true] %s4483_s24 }
0x207a   :  { %s5273_s25 = scalar_lea.vmem %s4484_s24, 16  ;;  %s5277_s26 = scalar_lea.vmem %s4484_s24, 32 }
0x207b   :  { %p5274_p0 = scmp.ne.s32.totalorder %s4484_s24, %s5273_s25  ;;  %p5278_p1 = scmp.lt.s32.totalorder %s4484_s24, %s4484_s24 }
0x207c   :  { %5138 = vmatpush3.bf16.msra.mxu1 %v5135_v36  ;;  %p5279_p2 = scmp.lt.s32.totalorder %s5277_s26, %s5273_s25 }
0x207e   :  { %p5280_p3 = por %p5279_p2, %p5278_p1 }
0x2080   :  { %p5281_p4 = pnand %p5280_p3, %p5274_p0 }
0x2143   :  { %v5030_v3 = vpop.f32.mrb[44].mxu0 }
0x2144   :  { %v4190_v37 = vadd.f32 %v5030_v3, %v4589_v23  ;;  %v4184_v38 = vpop.f32.mrb[45].mxu0 }
0x2145   :  { %v4185_v40 = vadd.f32 %v4589_v23, %v4184_v38 }
0x2146   :  { %v4194_v41 = vmul.f32 %v4190_v37, %v4190_v37 }
0x2147   :  { %v4193_v44 = vmul.f32 %v4185_v40, %v4185_v40 }
0x2148   :  { %v4196_v45 = vmul.f32 %v4194_v41, %v4190_v37 }
0x2149   :  { %v4195_v46 = vmul.f32 %v4193_v44, %v4185_v40 }
0x214a   :  { %v4198_v1 = vmul.f32 0.044715, %v4196_v45 }
0x214b   :  { %v4197_v47 = vmul.f32 0.044715, %v4195_v46 }
0x214c   :  { %v4200_v48 = vadd.f32 %v4198_v1, %v4190_v37 }
0x214d   :  { %v4199_v49 = vadd.f32 %v4197_v47, %v4185_v40 }
0x214e   :  { %v4202_v50 = vmul.f32 0.7978846, %v4200_v48 }
0x214f   :  { %v4201_v54 = vmul.f32 0.7978846, %v4199_v49 }
0x2150   :  { %5260 = vtanh.f32 %v4202_v50 }
0x2151   :  { %5262 = vtanh.f32 %v4201_v54 }
0x215a   :  { %v5261_v56 = vpop.eup %5260 }
0x215b   :  { %v5263_v55 = vpop.eup %5262  ;;  %v4206_v13 = vadd.f32 1.0, %v5261_v56 }
0x215c   :  { %v4205_v57 = vadd.f32 1.0, %v5263_v55 }
0x215d   :  { %v4208_v58 = vmul.f32 0.5, %v4206_v13 }
0x215e   :  { %v4207_v61 = vmul.f32 0.5, %v4205_v57 }
0x215f   :  { %v4210_v11 = vmul.f32 %v4208_v58, %v4190_v37 }
0x2160   :  { %v4209_v0 = vmul.f32 %v4207_v61, %v4185_v40 }
0x2162   :  { %5047 = vmatprep.mubr.msk.f32.mxu1 %vm2161_vm10, %v4209_v0 }
0x2163   :  { %5048 = vmatmul.mubr.msk.f32.vlgmr.msra.gmra.mrb[34].mxu1 %vm2161_vm10, %v4210_v11 }
0x2236   :  { %v5049_v2 = vpop.f32.mrb[34].mxu1 }
0x2237   :  { %v4302_v4 = vadd.f32 %v5049_v2, %v4592_v43  ;;  %v4296_v5 = vpop.f32.mrb[35].mxu1 }
0x2238   :  { %v4297_v63 = vadd.f32 %v4592_v43, %v4296_v5 }
0x2239   :  { %v4306_v62 = vadd.f32 %v4302_v4, %v4106_v51 }
0x223a   :  { %v4305_v59 = vadd.f32 %v4297_v63, %v4105_v60  ;;  %v5314_v60 = vmov 32  }
0x223b   :  { %v4312_v6 = vsel %vm141_vm7, %v4306_v62, 0.0  ;;  %5174 = vset.pattern.permute.xlu1 %v5314_v60  ;;  %5175 = vset.pattern.permute.xlu0 %v5314_v60 }
0x223c   :  { %4313 = vadd.xlane.f32.xlu0 %v4312_v6  ;;  %v4309_v24 = vsel %vm141_vm7, %v4305_v59, 0.0 }
0x223d   :  { %4310 = vadd.xlane.f32.xlu1 %v4309_v24 }
0x22c9   :  { %v4314_v9 = vpop.xlane.xlu0 %4313 }
0x22ca   :  { %v4316_v42 = vmul.f32 0.03125, %v4314_v9  ;;  %v4311_v10 = vpop.xlane.xlu1 %4310 }
0x22cb   :  { %v4315_v15 = vmul.f32 0.03125, %v4311_v10 }
0x22cc   :  { %v4318_v16 = vsub.f32 %v4306_v62, %v4316_v42 }
0x22cd   :  { %v4317_v20 = vsub.f32 %v4305_v59, %v4315_v15 }
0x22ce   :  { %v4320_v17 = vmul.f32 %v4318_v16, %v4318_v16 }
0x22cf   :  { %v4319_v52 = vmul.f32 %v4317_v20, %v4317_v20 }
0x22d0   :  { %v4324_v18 = vsel %vm141_vm7, %v4320_v17, 0.0 }
0x22d1   :  { %4325 = vadd.xlane.f32.xlu0 %v4324_v18  ;;  %v4321_v19 = vsel %vm141_vm7, %v4319_v52, 0.0 }
0x22d2   :  { %4322 = vadd.xlane.f32.xlu1 %v4321_v19 }
0x22d5   :  { %4379 = vadd.xlane.f32.xlu0 %v4378_v12 }
0x22e3   :  { %4359 = vbcast.lane.b32.xlu1 %v4357_v39, 256 }
0x22e7   :  { %4393 = vperm.xlu1 %5174, %v4390_v7  }
0x22eb   :  { %4352 = vbcast.lane.b32.xlu0 %v4350_v8, 256 }
0x235e   :  { %v4326_v51 = vpop.xlane.xlu0 %4325 }
0x235f   :  { %v4328_v27 = vmul.f32 0.03125, %v4326_v51  ;;  %v4323_v28 = vpop.xlane.xlu1 %4322 }
0x2360   :  { %v4327_v30 = vmul.f32 0.03125, %v4323_v28 }
0x2361   :  { %v4330_v53 = vadd.f32 1e-12, %v4328_v27 }
0x2362   :  { %v4329_v31 = vadd.f32 1e-12, %v4327_v30  ;;  %v4380_v14 = vpop.xlane.xlu0 %4379 }
0x2363   :  { %5264 = vrsqrt.f32 %v4330_v53  ;;  %v4381_v22 = vmax.f32 %v4380_v14, 1.0  ;;  %v4360_v23 = vpop.permute.xlu1 %4359 }
0x2364   :  { %5266 = vrsqrt.f32 %v4329_v31 }
0x2365   :  { %v4383_v41 = vrot.slane %v4381_v22, 1 }
0x2366   :  { %v4353_v38 = vpop.permute.xlu0 %4352 }
0x2367   :  { %5268 = vrcp.f32 %v4383_v41  ;;  %v4394_v62 = vpop.permute.xlu1 %4393 }
0x2368   :  { %5270 = vrcp.f32 %v4381_v22 }
0x236d   :  { %v5265_v29 = vpop.eup %5264 }
0x236e   :  { %v5267_v32 = vpop.eup %5266  ;;  %v4334_v33 = vmul.f32 %v5265_v29, %v4318_v16 }
0x236f   :  { %v4333_v35 = vmul.f32 %v5267_v32, %v4317_v20 }
0x2370   :  { %v4340_v36 = vmul.f32 %v4595_v21, %v4334_v33 }
0x2371   :  { %v4339_v3 = vmul.f32 %v4595_v21, %v4333_v35  ;;  %v5269_v0 = vpop.eup %5268 }
0x2372   :  { %v4346_v37 = vadd.f32 %v4596_v34, %v4340_v36  ;;  %v5271_v43 = vpop.eup %5270 }
0x2373   :  { %v4345_v40 = vadd.f32 %v4596_v34, %v4339_v3 }
0x2374   :  { %v4362_v44 = vmul.f32 %v4360_v23, %v4346_v37 }
0x2375   :  { %v4361_v45 = vmul.f32 %v4353_v38, %v4345_v40 }
0x2376   :  { %v4370_v46 = vsel %vm141_vm7, %v4362_v44, 0.0 }
0x2377   :  { %v4371_v1 = vrot.slane %v4370_v46, 4  ;;  %v4363_v47 = vsel %vm141_vm7, %v4361_v45, 0.0 }
0x2378   :  { %v4364_v48 = vrot.slane %v4363_v47, 4 }
0x2379   :  { %v4372_v49 = vadd.f32 %v4371_v1, %v4370_v46 }
0x237a   :  { %v4365_v50 = vadd.f32 %v4364_v48, %v4363_v47 }
0x237b   :  { %v4373_v54 = vrot.slane %v4372_v49, 2 }
0x237c   :  { %v4366_v56 = vrot.slane %v4365_v50, 2 }
0x237d   :  { %v4374_v55 = vadd.f32 %v4373_v54, %v4372_v49 }
0x237e   :  { %v4367_v13 = vadd.f32 %v4366_v56, %v4365_v50 }
0x237f   :  { %v4375_v57 = vrot.slane %v4374_v55, 1 }
0x2380   :  { %v4368_v58 = vrot.slane %v4367_v13, 1 }
0x2381   :  { %v4376_v61 = vadd.f32 %v4375_v57, %v4374_v55 }
0x2382   :  { %v4369_v11 = vadd.f32 %v4368_v58, %v4367_v13 }
0x2383   :  { %v4389_v2 = vmul.f32 %v5269_v0, %v4376_v61 }
0x2384   :  { %v4387_v4 = vmul.f32 %v5271_v43, %v4369_v11 }
0x2385   :  { %v4398_v5 = vrot.slane %v4389_v2, 7 }
0x2387   :  { %v4400_v63 = vsel %vm4399_vm12, %v4398_v5, %v4387_v4 }
0x2388   :  { %5051 = vmatpush3.xpose.msk.msra.mxu0 %vm141_vm7, %v4400_v63 }
0x238b   :  { %5053 = vmatmul.mubr.msk.f32.vlgmr.msra.gmra.mrb[46].mxu0 %vm141_vm7, %v4390_v7 }
0x245e   :  { %v4471_v59 = vpop.f32.mrb[46].mxu0 }
0x245f   :  { %v5054_v6 = vpop.f32.mrb[47].mxu0  ;;  %v4472_v24 = vadd.f32 %v4471_v59, %v4394_v62 }
0x2461   :  { %4476 = vst.msk [vmem:[#allocation2] sm:$0x1] %vm4475_vm13, %v4472_v24 }
0x2462   :  { %5284 = shalt.err (!%p5281_p4)
}
0x2463   :  { %s5285_s29 = scalar_lea.hbm %s6008_s5, 16 }
0x2464   :  { %p5286_p5 = scmp.ne.s32.totalorder %s6008_s5, %s5285_s29  ;;  %p5289_p6 = scmp.lt.u32.totalorder %s5285_s29, %s6008_s5 }
0x2466   :  { %p5291_p7 = pnand %p5289_p6, %p5286_p5 }
0x2468   :  { %5294 = shalt.err (!%p5291_p7)
}
0x2469   :  { %4486 = dma.vmem_to_hbm [thread:$0]  %s4484_s24, 16, %s6008_s5, [#allocation3]  }
0x246a   :  { %5295 = dma.done.wait [#allocation3], 16  }
0x246b   :  { %5296 = vsyncadd [#allocation3], 4294967280 }
0x246c   :  { %4490 = vsyncpa [#allocation3], 1 }

</bundles_post_ra>
